<compile_context>
chip_gen: v7x
topology: tpu7x:2x2x1
jax: 0.10.0
libtpu: 0.0.40
codegen_flags: <defaults>
</compile_context>

<pallas_src>
import jax
import jax.numpy as jnp
from jax import lax
from jax.experimental import pallas as pl
from jax.experimental.pallas import tpu as pltpu

B = 2      # batch
L = 8      # sequence length
E = 32     # embedding size
H = 32     # hidden size
K = 4      # conv1d kernel size
EPS = 1e-5  # LayerNorm eps

# ------------------ packed-parameter layout (rows x 128 lanes) ------------- #
# Every block starts at lane 0; weight blocks start at sublane multiples of 8.
OFF_WG = 0                     # fused gate weights  (E, 3H)
OFF_WO = OFF_WG + E            # cell out weights    (H, E)
OFF_WC = OFF_WO + H            # conv im2col weights (K*E, E)
OFF_W2 = OFF_WC + K * E        # MLP second weights  (4E, E)
OFF_W1 = OFF_W2 + 4 * E        # MLP first weights   (E, 4E)
OFF_VEC = OFF_W1 + E           # one-row vectors below
(ROW_LN_G, ROW_LN_B, ROW_BO, ROW_BC,
 ROW_BG, ROW_B2, ROW_B1) = range(OFF_VEC, OFF_VEC + 7)
P_ROWS = OFF_VEC + 8           # 360 rows (multiple of 8)
P_LANES = 128


# ----------------------------- math helpers ------------------------------ #
def _softplus(x):
    # numerically stable softplus, lowers to VPU/EUP ops
    return jnp.maximum(x, 0.0) + jnp.log(1.0 + jnp.exp(-jnp.abs(x)))


def _log_g(x):
    return jnp.where(x >= 0.0, jnp.log(jnp.maximum(x, 0.0) + 0.5), -_softplus(-x))


def _layer_norm(x, gamma, beta):
    # independent sum(x) / sum(x*x) reductions so the XLU can overlap them
    inv_n = 1.0 / x.shape[-1]
    s1 = jnp.sum(x, axis=-1, keepdims=True)
    s2 = jnp.sum(x * x, axis=-1, keepdims=True)
    mu = s1 * inv_n
    var = s2 * inv_n - mu * mu
    return (x - mu) * lax.rsqrt(var + EPS) * gamma + beta


# ------------------------------ the kernel -------------------------------- #
def minrnn_kernel(x_ref, h0_ref, p_ref, y_ref, hout_ref, am_ref, ss_ref):
    lb_rows, e = x_ref.shape          # (L*B, E), time-major, batch fastest
    bsz, h = h0_ref.shape             # (B, H)
    seq = lb_rows // bsz

    x = x_ref[...]                    # (L*B, E)

    # ---- unpack parameters: static slices of one lane-dense packed buffer ----
    ln_g = p_ref[ROW_LN_G:ROW_LN_G + 1, 0:e]
    ln_b = p_ref[ROW_LN_B:ROW_LN_B + 1, 0:e]
    bo = p_ref[ROW_BO:ROW_BO + 1, 0:e]
    bc = p_ref[ROW_BC:ROW_BC + 1, 0:e]
    bg = p_ref[ROW_BG:ROW_BG + 1, 0:3 * h]
    b2 = p_ref[ROW_B2:ROW_B2 + 1, 0:e]
    b1 = p_ref[ROW_B1:ROW_B1 + 1, 0:4 * e]

    # ---- layer_norm + dropout(eval) ----
    x1 = _layer_norm(x, ln_g, ln_b)

    # ---- minLSTM cell (log-space): one fused (E, 3H) gate matmul ----
    gates = jnp.dot(x1, p_ref[OFF_WG:OFF_WG + e, 0:3 * h],
                    preferred_element_type=jnp.float32) + bg
    kf = gates[:, 0:h]
    ki = gates[:, h:2 * h]
    kh = gates[:, 2 * h:3 * h]
    diff = _softplus(-kf) - _softplus(-ki)
    lf = -_softplus(diff)                 # log forget coefficients
    # -softplus(-diff) == diff - softplus(diff) == diff + lf  (drops a softplus)
    lb = diff + lf + _log_g(kh)           # log_i + log_tilde_h   (t >= 1)

    # ---- sequential log-space scan: unrolled, batch-vectorized, vreg-resident ----
    a = jnp.zeros((bsz, h), jnp.float32)  # a_star
    m = _log_g(h0_ref[...])               # running max of (log_values - a_star)
    s = jnp.ones((bsz, h), jnp.float32)   # running rescaled sum
    for t in range(seq):
        a = a + lf[t * bsz:(t + 1) * bsz, :]
        v = lb[t * bsz:(t + 1) * bsz, :] - a
        d = jnp.exp(-jnp.abs(m - v))      # single exp per step (exact rewrite)
        ge = m >= v
        m = jnp.where(ge, m, v)
        s = jnp.where(ge, s + d, s * d + 1.0)
        am_ref[pl.ds(t * bsz, bsz), :] = a + m   # off the carry chain
        ss_ref[pl.ds(t * bsz, bsz), :] = s
    hout_ref[...] = jnp.exp(a + m) * s           # last-timestep hidden state

    # deferred exp/log: one vectorized EUP burst instead of per-step exps
    h_all = jnp.exp(am_ref[...]) * ss_ref[...]   # (L*B, H)

    cell_out = jnp.dot(h_all, p_ref[OFF_WO:OFF_WO + h, 0:e],
                       preferred_element_type=jnp.float32) + bo      # (L*B, E)

    # ---- residual + layer_norm ----
    x2 = x1 + cell_out
    x3 = _layer_norm(x2, ln_g, ln_b)

    # ---- Conv1d(E, E, K, padding='same'): im2col built in-register ----
    # time shifts via sublane rotation (XLU), boundary rows zero-masked,
    # lane-concatenated into one (L*B, K*E) operand -> single MXU matmul.
    rows = lax.broadcasted_iota(jnp.int32, (lb_rows, e), 0)
    tm1 = jnp.where(rows >= bsz,
                    pltpu.roll(x3, bsz, axis=0), 0.0)                 # time t-1
    tp1 = jnp.where(rows < lb_rows - bsz,
                    pltpu.roll(x3, lb_rows - bsz, axis=0), 0.0)       # time t+1
    tp2 = jnp.where(rows < lb_rows - 2 * bsz,
                    pltpu.roll(x3, lb_rows - 2 * bsz, axis=0), 0.0)   # time t+2
    im2col = jnp.concatenate([tm1, x3, tp1, tp2], axis=1)             # (L*B, K*E)
    y_conv = jnp.dot(im2col, p_ref[OFF_WC:OFF_WC + K * e, 0:e],
                     preferred_element_type=jnp.float32) + bc         # (L*B, E)

    x4 = x3 + y_conv
    x5 = _layer_norm(x4, ln_g, ln_b)

    # ---- MLP: Linear(E,4E) -> dropout(eval) -> ReLU -> Linear(4E,E) ----
    m1 = jnp.dot(x5, p_ref[OFF_W1:OFF_W1 + e, 0:4 * e],
                 preferred_element_type=jnp.float32) + b1
    m1 = jnp.maximum(m1, 0.0)
    m2 = jnp.dot(m1, p_ref[OFF_W2:OFF_W2 + 4 * e, 0:e],
                 preferred_element_type=jnp.float32) + b2
    y_ref[...] = x5 + m2


# ------------------------------- wrapper ---------------------------------- #
def pack_params(params):
    """Pack all layer parameters into one lane-dense (P_ROWS, 128) f32 buffer.

    One-time layout plumbing (pre-compute once, reuse every call): collapses
    12 small parameter DMAs into a single descriptor.
    """
    w_gates = jnp.concatenate([params["wf"], params["wi"], params["wh"]], axis=1)
    b_gates = jnp.concatenate([params["bf"], params["bi"], params["bh"]], axis=1)
    wc_flat = params["wc"].reshape(K * E, E)

    p = jnp.zeros((P_ROWS, P_LANES), jnp.float32)
    p = p.at[OFF_WG:OFF_WG + E, 0:3 * H].set(w_gates)
    p = p.at[OFF_WO:OFF_WO + H, 0:E].set(params["wo"])
    p = p.at[OFF_WC:OFF_WC + K * E, 0:E].set(wc_flat)
    p = p.at[OFF_W2:OFF_W2 + 4 * E, 0:E].set(params["w2"])
    p = p.at[OFF_W1:OFF_W1 + E, 0:4 * E].set(params["w1"])
    p = p.at[ROW_LN_G, 0:E].set(params["ln_g"][0])
    p = p.at[ROW_LN_B, 0:E].set(params["ln_b"][0])
    p = p.at[ROW_BO, 0:E].set(params["bo"][0])
    p = p.at[ROW_BC, 0:E].set(params["bc"][0])
    p = p.at[ROW_BG, 0:3 * H].set(b_gates[0])
    p = p.at[ROW_B2, 0:E].set(params["b2"][0])
    p = p.at[ROW_B1, 0:4 * E].set(params["b1"][0])
    return p


def minrnn_layer(x, h0, packed_params):
    b, l, e = x.shape
    h = h0.shape[-1]
    lb = l * b

    # time-major, batch-fastest flattening: row r = t*b + batch
    xt = jnp.transpose(x, (1, 0, 2)).reshape(lb, e)
    h0r = h0.reshape(b, h)

    y_flat, h_last = pl.pallas_call(
        minrnn_kernel,
        out_shape=(jax.ShapeDtypeStruct((lb, e), jnp.float32),
                   jax.ShapeDtypeStruct((b, h), jnp.float32)),
        scratch_shapes=[
            pltpu.VMEM((lb, h), jnp.float32),   # a_star + running max
            pltpu.VMEM((lb, h), jnp.float32),   # running rescaled sum
        ],
    )(xt, h0r, packed_params)

    y = jnp.transpose(y_flat.reshape(l, b, e), (1, 0, 2))
    return y, h_last.reshape(b, 1, h)


# ----------------------- pure-JAX reference (check) ------------------------ #
def _ln_ref(x, g, b):
    mu = jnp.mean(x, axis=-1, keepdims=True)
    var = jnp.mean((x - mu) ** 2, axis=-1, keepdims=True)
    return (x - mu) / jnp.sqrt(var + EPS) * g + b


def _parallel_scan_log_ref(log_coeffs, log_values):
    a_star = jnp.pad(jnp.cumsum(log_coeffs, axis=1), ((0, 0), (1, 0), (0, 0)))
    lcse = lax.cumlogsumexp(log_values - a_star, axis=1)
    return jnp.exp(a_star + lcse)[:, 1:]


def reference(x, h0, p):
    x1 = _ln_ref(x, p["ln_g"][0], p["ln_b"][0])
    kf = x1 @ p["wf"] + p["bf"]
    ki = x1 @ p["wi"] + p["bi"]
    kh = x1 @ p["wh"] + p["bh"]
    diff = _softplus(-kf) - _softplus(-ki)
    log_f = -_softplus(diff)
    log_i = -_softplus(-diff)
    log_values = jnp.concatenate([_log_g(h0), log_i + _log_g(kh)], axis=1)
    h = _parallel_scan_log_ref(log_f, log_values)
    cell_out = h @ p["wo"] + p["bo"]
    h_last = h[:, -1:, :]
    x2 = x1 + cell_out
    x3 = _ln_ref(x2, p["ln_g"][0], p["ln_b"][0])
    x3p = jnp.pad(x3, ((0, 0), (1, 2), (0, 0)))
    y = jnp.broadcast_to(p["bc"], x3.shape)
    for j in range(K):
        y = y + x3p[:, j:j + L, :] @ p["wc"][j]
    x4 = x3 + y
    x5 = _ln_ref(x4, p["ln_g"][0], p["ln_b"][0])
    m1 = jnp.maximum(x5 @ p["w1"] + p["b1"], 0.0)
    x6 = x5 + m1 @ p["w2"] + p["b2"]
    return x6, h_last


# --------------------------------- main ------------------------------------ #
if __name__ == "__main__":
    key = jax.random.PRNGKey(0)
    ks = jax.random.split(key, 24)

    def nrm(k, shape, scale=0.1):
        return jax.random.normal(k, shape, jnp.float32) * scale

    params = {
        "ln_g": 1.0 + nrm(ks[2], (1, E)),
        "ln_b": nrm(ks[3], (1, E)),
        "wf": nrm(ks[4], (E, H)), "bf": nrm(ks[5], (1, H)),
        "wi": nrm(ks[6], (E, H)), "bi": nrm(ks[7], (1, H)),
        "wh": nrm(ks[8], (E, H)), "bh": nrm(ks[9], (1, H)),
        "wo": nrm(ks[10], (H, E)), "bo": nrm(ks[11], (1, E)),
        "wc": nrm(ks[12], (K, E, E)), "bc": nrm(ks[13], (1, E)),
        "w1": nrm(ks[14], (E, 4 * E)), "b1": nrm(ks[15], (1, 4 * E)),
        "w2": nrm(ks[16], (4 * E, E)), "b2": nrm(ks[17], (1, E)),
    }

    x = jax.random.normal(ks[0], (B, L, E), jnp.float32)
    h0 = jax.random.normal(ks[1], (B, 1, H), jnp.float32)

    packed = pack_params(params)          # one-time parameter packing
    y, h_out = minrnn_layer(x, h0, packed)
    jax.block_until_ready((y, h_out))

    y_ref, h_ref = reference(x, h0, params)
    assert y.shape == (B, L, E) and h_out.shape == (B, 1, H)
    assert jnp.allclose(y, y_ref, atol=2e-3, rtol=2e-3)
    assert jnp.allclose(h_out, h_ref, atol=2e-3, rtol=2e-3)

    print("KERNEL_OK")
</pallas_src>

<mosaic_0001>
module attributes {stable_mosaic.version = 11 : i64} {
  func.func @minrnn_kernel(%arg0: memref<16x32xf32, #tpu.memory_space<vmem>>, %arg1: memref<2x32xf32, #tpu.memory_space<vmem>>, %arg2: memref<360x128xf32, #tpu.memory_space<vmem>>, %arg3: memref<16x32xf32, #tpu.memory_space<vmem>>, %arg4: memref<2x32xf32, #tpu.memory_space<vmem>>, %arg5: memref<16x32xf32, #tpu.memory_space<vmem>>, %arg6: memref<16x32xf32, #tpu.memory_space<vmem>>) attributes {dimension_semantics = [], scalar_prefetch = 0 : i64, scratch_operands = 2 : i64, tpu.core_type = #tpu.core_type<tc>} {
    %c0 = arith.constant 0 : index
    %c0_0 = arith.constant 0 : index
    %0 = vector.load %arg0[%c0, %c0_0] : memref<16x32xf32, #tpu.memory_space<vmem>>, vector<16x32xf32>
    %c352 = arith.constant 352 : index
    %c0_1 = arith.constant 0 : index
    %1 = vector.load %arg2[%c352, %c0_1] : memref<360x128xf32, #tpu.memory_space<vmem>>, vector<1x32xf32>
    %c353 = arith.constant 353 : index
    %c0_2 = arith.constant 0 : index
    %2 = vector.load %arg2[%c353, %c0_2] : memref<360x128xf32, #tpu.memory_space<vmem>>, vector<1x32xf32>
    %c354 = arith.constant 354 : index
    %c0_3 = arith.constant 0 : index
    %3 = vector.load %arg2[%c354, %c0_3] : memref<360x128xf32, #tpu.memory_space<vmem>>, vector<1x32xf32>
    %c355 = arith.constant 355 : index
    %c0_4 = arith.constant 0 : index
    %4 = vector.load %arg2[%c355, %c0_4] : memref<360x128xf32, #tpu.memory_space<vmem>>, vector<1x32xf32>
    %c356 = arith.constant 356 : index
    %c0_5 = arith.constant 0 : index
    %5 = vector.load %arg2[%c356, %c0_5] : memref<360x128xf32, #tpu.memory_space<vmem>>, vector<1x96xf32>
    %c357 = arith.constant 357 : index
    %c0_6 = arith.constant 0 : index
    %6 = vector.load %arg2[%c357, %c0_6] : memref<360x128xf32, #tpu.memory_space<vmem>>, vector<1x32xf32>
    %c358 = arith.constant 358 : index
    %c0_7 = arith.constant 0 : index
    %7 = vector.load %arg2[%c358, %c0_7] : memref<360x128xf32, #tpu.memory_space<vmem>>, vector<1x128xf32>
    %cst = arith.constant dense<0.000000e+00> : vector<16xf32>
    %8 = vector.multi_reduction <add>, %0, %cst [1] : vector<16x32xf32> to vector<16xf32>
    %9 = vector.shape_cast %8 : vector<16xf32> to vector<16x1xf32>
    %10 = arith.mulf %0, %0 : vector<16x32xf32>
    %cst_8 = arith.constant dense<0.000000e+00> : vector<16xf32>
    %11 = vector.multi_reduction <add>, %10, %cst_8 [1] : vector<16x32xf32> to vector<16xf32>
    %12 = vector.shape_cast %11 : vector<16xf32> to vector<16x1xf32>
    %cst_9 = arith.constant 3.125000e-02 : f32
    %13 = vector.broadcast %cst_9 : f32 to vector<16x1xf32>
    %14 = arith.mulf %9, %13 : vector<16x1xf32>
    %cst_10 = arith.constant 3.125000e-02 : f32
    %15 = vector.broadcast %cst_10 : f32 to vector<16x1xf32>
    %16 = arith.mulf %12, %15 : vector<16x1xf32>
    %17 = arith.mulf %14, %14 : vector<16x1xf32>
    %18 = arith.subf %16, %17 : vector<16x1xf32>
    %19 = vector.broadcast %14 : vector<16x1xf32> to vector<16x32xf32>
    %20 = arith.subf %0, %19 : vector<16x32xf32>
    %cst_11 = arith.constant 9.99999974E-6 : f32
    %21 = vector.broadcast %cst_11 : f32 to vector<16x1xf32>
    %22 = arith.addf %18, %21 : vector<16x1xf32>
    %23 = math.rsqrt %22 : vector<16x1xf32>
    %24 = vector.broadcast %23 : vector<16x1xf32> to vector<16x32xf32>
    %25 = arith.mulf %20, %24 : vector<16x32xf32>
    %26 = vector.broadcast %1 : vector<1x32xf32> to vector<16x32xf32>
    %27 = arith.mulf %25, %26 : vector<16x32xf32>
    %28 = vector.broadcast %2 : vector<1x32xf32> to vector<16x32xf32>
    %29 = arith.addf %27, %28 : vector<16x32xf32>
    %c0_12 = arith.constant 0 : index
    %c0_13 = arith.constant 0 : index
    %30 = vector.load %arg2[%c0_12, %c0_13] : memref<360x128xf32, #tpu.memory_space<vmem>>, vector<32x96xf32>
    %cst_14 = arith.constant dense<0.000000e+00> : vector<16x96xf32>
    %31 = tpu.matmul %29, %30, %cst_14 {dimension_numbers = #tpu.dot_dimension_numbers<[1], [0], [0], [1], [0, 0, 1, 1], [], []>} : vector<16x32xf32>, vector<32x96xf32>, vector<16x96xf32> -> vector<16x96xf32>
    %32 = vector.broadcast %5 : vector<1x96xf32> to vector<16x96xf32>
    %33 = arith.addf %31, %32 : vector<16x96xf32>
    %34 = vector.extract_strided_slice %33 {offsets = [0, 0], sizes = [16, 32], strides = [1, 1]} : vector<16x96xf32> to vector<16x32xf32>
    %35 = vector.extract_strided_slice %33 {offsets = [0, 32], sizes = [16, 32], strides = [1, 1]} : vector<16x96xf32> to vector<16x32xf32>
    %36 = vector.extract_strided_slice %33 {offsets = [0, 64], sizes = [16, 32], strides = [1, 1]} : vector<16x96xf32> to vector<16x32xf32>
    %cst_15 = arith.constant 0.000000e+00 : f32
    %37 = vector.broadcast %cst_15 : f32 to vector<16x32xf32>
    %38 = arith.subf %37, %34 : vector<16x32xf32>
    %cst_16 = arith.constant 0.000000e+00 : f32
    %39 = vector.broadcast %cst_16 : f32 to vector<16x32xf32>
    %40 = arith.maximumf %38, %39 : vector<16x32xf32>
    %41 = math.absf %38 : vector<16x32xf32>
    %cst_17 = arith.constant 0.000000e+00 : f32
    %42 = vector.broadcast %cst_17 : f32 to vector<16x32xf32>
    %43 = arith.subf %42, %41 : vector<16x32xf32>
    %44 = math.exp %43 : vector<16x32xf32>
    %cst_18 = arith.constant 1.000000e+00 : f32
    %45 = vector.broadcast %cst_18 : f32 to vector<16x32xf32>
    %46 = arith.addf %45, %44 : vector<16x32xf32>
    %47 = math.log %46 : vector<16x32xf32>
    %48 = arith.addf %40, %47 : vector<16x32xf32>
    %cst_19 = arith.constant 0.000000e+00 : f32
    %49 = vector.broadcast %cst_19 : f32 to vector<16x32xf32>
    %50 = arith.subf %49, %35 : vector<16x32xf32>
    %cst_20 = arith.constant 0.000000e+00 : f32
    %51 = vector.broadcast %cst_20 : f32 to vector<16x32xf32>
    %52 = arith.maximumf %50, %51 : vector<16x32xf32>
    %53 = math.absf %50 : vector<16x32xf32>
    %cst_21 = arith.constant 0.000000e+00 : f32
    %54 = vector.broadcast %cst_21 : f32 to vector<16x32xf32>
    %55 = arith.subf %54, %53 : vector<16x32xf32>
    %56 = math.exp %55 : vector<16x32xf32>
    %cst_22 = arith.constant 1.000000e+00 : f32
    %57 = vector.broadcast %cst_22 : f32 to vector<16x32xf32>
    %58 = arith.addf %57, %56 : vector<16x32xf32>
    %59 = math.log %58 : vector<16x32xf32>
    %60 = arith.addf %52, %59 : vector<16x32xf32>
    %61 = arith.subf %48, %60 : vector<16x32xf32>
    %cst_23 = arith.constant 0.000000e+00 : f32
    %62 = vector.broadcast %cst_23 : f32 to vector<16x32xf32>
    %63 = arith.maximumf %61, %62 : vector<16x32xf32>
    %64 = math.absf %61 : vector<16x32xf32>
    %cst_24 = arith.constant 0.000000e+00 : f32
    %65 = vector.broadcast %cst_24 : f32 to vector<16x32xf32>
    %66 = arith.subf %65, %64 : vector<16x32xf32>
    %67 = math.exp %66 : vector<16x32xf32>
    %cst_25 = arith.constant 1.000000e+00 : f32
    %68 = vector.broadcast %cst_25 : f32 to vector<16x32xf32>
    %69 = arith.addf %68, %67 : vector<16x32xf32>
    %70 = math.log %69 : vector<16x32xf32>
    %71 = arith.addf %63, %70 : vector<16x32xf32>
    %cst_26 = arith.constant 0.000000e+00 : f32
    %72 = vector.broadcast %cst_26 : f32 to vector<16x32xf32>
    %73 = arith.subf %72, %71 : vector<16x32xf32>
    %74 = arith.addf %61, %73 : vector<16x32xf32>
    %cst_27 = arith.constant 0.000000e+00 : f32
    %75 = vector.broadcast %cst_27 : f32 to vector<16x32xf32>
    %76 = arith.cmpf oge, %36, %75 : vector<16x32xf32>
    %cst_28 = arith.constant 0.000000e+00 : f32
    %77 = vector.broadcast %cst_28 : f32 to vector<16x32xf32>
    %78 = arith.maximumf %36, %77 : vector<16x32xf32>
    %cst_29 = arith.constant 5.000000e-01 : f32
    %79 = vector.broadcast %cst_29 : f32 to vector<16x32xf32>
    %80 = arith.addf %78, %79 : vector<16x32xf32>
    %81 = math.log %80 : vector<16x32xf32>
    %cst_30 = arith.constant 0.000000e+00 : f32
    %82 = vector.broadcast %cst_30 : f32 to vector<16x32xf32>
    %83 = arith.subf %82, %36 : vector<16x32xf32>
    %cst_31 = arith.constant 0.000000e+00 : f32
    %84 = vector.broadcast %cst_31 : f32 to vector<16x32xf32>
    %85 = arith.maximumf %83, %84 : vector<16x32xf32>
    %86 = math.absf %83 : vector<16x32xf32>
    %cst_32 = arith.constant 0.000000e+00 : f32
    %87 = vector.broadcast %cst_32 : f32 to vector<16x32xf32>
    %88 = arith.subf %87, %86 : vector<16x32xf32>
    %89 = math.exp %88 : vector<16x32xf32>
    %cst_33 = arith.constant 1.000000e+00 : f32
    %90 = vector.broadcast %cst_33 : f32 to vector<16x32xf32>
    %91 = arith.addf %90, %89 : vector<16x32xf32>
    %92 = math.log %91 : vector<16x32xf32>
    %93 = arith.addf %85, %92 : vector<16x32xf32>
    %cst_34 = arith.constant 0.000000e+00 : f32
    %94 = vector.broadcast %cst_34 : f32 to vector<16x32xf32>
    %95 = arith.subf %94, %93 : vector<16x32xf32>
    %96 = arith.select %76, %81, %95 : vector<16x32xi1>, vector<16x32xf32>
    %97 = arith.addf %74, %96 : vector<16x32xf32>
    %cst_35 = arith.constant 0.000000e+00 : f32
    %98 = vector.broadcast %cst_35 : f32 to vector<2x32xf32>
    %c0_36 = arith.constant 0 : index
    %c0_37 = arith.constant 0 : index
    %99 = vector.load %arg1[%c0_36, %c0_37] : memref<2x32xf32, #tpu.memory_space<vmem>>, vector<2x32xf32>
    %cst_38 = arith.constant 0.000000e+00 : f32
    %100 = vector.broadcast %cst_38 : f32 to vector<2x32xf32>
    %101 = arith.cmpf oge, %99, %100 : vector<2x32xf32>
    %cst_39 = arith.constant 0.000000e+00 : f32
    %102 = vector.broadcast %cst_39 : f32 to vector<2x32xf32>
    %103 = arith.maximumf %99, %102 : vector<2x32xf32>
    %cst_40 = arith.constant 5.000000e-01 : f32
    %104 = vector.broadcast %cst_40 : f32 to vector<2x32xf32>
    %105 = arith.addf %103, %104 : vector<2x32xf32>
    %106 = math.log %105 : vector<2x32xf32>
    %cst_41 = arith.constant 0.000000e+00 : f32
    %107 = vector.broadcast %cst_41 : f32 to vector<2x32xf32>
    %108 = arith.subf %107, %99 : vector<2x32xf32>
    %cst_42 = arith.constant 0.000000e+00 : f32
    %109 = vector.broadcast %cst_42 : f32 to vector<2x32xf32>
    %110 = arith.maximumf %108, %109 : vector<2x32xf32>
    %111 = math.absf %108 : vector<2x32xf32>
    %cst_43 = arith.constant 0.000000e+00 : f32
    %112 = vector.broadcast %cst_43 : f32 to vector<2x32xf32>
    %113 = arith.subf %112, %111 : vector<2x32xf32>
    %114 = math.exp %113 : vector<2x32xf32>
    %cst_44 = arith.constant 1.000000e+00 : f32
    %115 = vector.broadcast %cst_44 : f32 to vector<2x32xf32>
    %116 = arith.addf %115, %114 : vector<2x32xf32>
    %117 = math.log %116 : vector<2x32xf32>
    %118 = arith.addf %110, %117 : vector<2x32xf32>
    %cst_45 = arith.constant 0.000000e+00 : f32
    %119 = vector.broadcast %cst_45 : f32 to vector<2x32xf32>
    %120 = arith.subf %119, %118 : vector<2x32xf32>
    %121 = arith.select %101, %106, %120 : vector<2x32xi1>, vector<2x32xf32>
    %cst_46 = arith.constant 1.000000e+00 : f32
    %122 = vector.broadcast %cst_46 : f32 to vector<2x32xf32>
    %123 = vector.extract_strided_slice %73 {offsets = [0, 0], sizes = [2, 32], strides = [1, 1]} : vector<16x32xf32> to vector<2x32xf32>
    %124 = arith.addf %98, %123 : vector<2x32xf32>
    %125 = vector.extract_strided_slice %97 {offsets = [0, 0], sizes = [2, 32], strides = [1, 1]} : vector<16x32xf32> to vector<2x32xf32>
    %126 = arith.subf %125, %124 : vector<2x32xf32>
    %127 = arith.subf %121, %126 : vector<2x32xf32>
    %128 = math.absf %127 : vector<2x32xf32>
    %cst_47 = arith.constant 0.000000e+00 : f32
    %129 = vector.broadcast %cst_47 : f32 to vector<2x32xf32>
    %130 = arith.subf %129, %128 : vector<2x32xf32>
    %131 = math.exp %130 : vector<2x32xf32>
    %132 = arith.cmpf oge, %121, %126 : vector<2x32xf32>
    %133 = arith.select %132, %121, %126 : vector<2x32xi1>, vector<2x32xf32>
    %134 = arith.addf %122, %131 : vector<2x32xf32>
    %135 = arith.mulf %122, %131 : vector<2x32xf32>
    %cst_48 = arith.constant 1.000000e+00 : f32
    %136 = vector.broadcast %cst_48 : f32 to vector<2x32xf32>
    %137 = arith.addf %135, %136 : vector<2x32xf32>
    %138 = arith.select %132, %134, %137 : vector<2x32xi1>, vector<2x32xf32>
    %139 = arith.addf %124, %133 : vector<2x32xf32>
    %c0_49 = arith.constant 0 : index
    %c0_50 = arith.constant 0 : index
    %140 = vector.load %arg5[%c0_49, %c0_50] : memref<16x32xf32, #tpu.memory_space<vmem>>, vector<2x32xf32>
    tpu.vector_store %arg5[%c0_49, %c0_50], %139 {strides = array<i32>} : memref<16x32xf32, #tpu.memory_space<vmem>>, vector<2x32xf32>,
    %c0_51 = arith.constant 0 : index
    %c0_52 = arith.constant 0 : index
    %141 = vector.load %arg6[%c0_51, %c0_52] : memref<16x32xf32, #tpu.memory_space<vmem>>, vector<2x32xf32>
    tpu.vector_store %arg6[%c0_51, %c0_52], %138 {strides = array<i32>} : memref<16x32xf32, #tpu.memory_space<vmem>>, vector<2x32xf32>,
    %142 = vector.extract_strided_slice %73 {offsets = [2, 0], sizes = [2, 32], strides = [1, 1]} : vector<16x32xf32> to vector<2x32xf32>
    %143 = arith.addf %124, %142 : vector<2x32xf32>
    %144 = vector.extract_strided_slice %97 {offsets = [2, 0], sizes = [2, 32], strides = [1, 1]} : vector<16x32xf32> to vector<2x32xf32>
    %145 = arith.subf %144, %143 : vector<2x32xf32>
    %146 = arith.subf %133, %145 : vector<2x32xf32>
    %147 = math.absf %146 : vector<2x32xf32>
    %cst_53 = arith.constant 0.000000e+00 : f32
    %148 = vector.broadcast %cst_53 : f32 to vector<2x32xf32>
    %149 = arith.subf %148, %147 : vector<2x32xf32>
    %150 = math.exp %149 : vector<2x32xf32>
    %151 = arith.cmpf oge, %133, %145 : vector<2x32xf32>
    %152 = arith.select %151, %133, %145 : vector<2x32xi1>, vector<2x32xf32>
    %153 = arith.addf %138, %150 : vector<2x32xf32>
    %154 = arith.mulf %138, %150 : vector<2x32xf32>
    %cst_54 = arith.constant 1.000000e+00 : f32
    %155 = vector.broadcast %cst_54 : f32 to vector<2x32xf32>
    %156 = arith.addf %154, %155 : vector<2x32xf32>
    %157 = arith.select %151, %153, %156 : vector<2x32xi1>, vector<2x32xf32>
    %158 = arith.addf %143, %152 : vector<2x32xf32>
    %c2 = arith.constant 2 : index
    %c0_55 = arith.constant 0 : index
    %159 = vector.load %arg5[%c2, %c0_55] : memref<16x32xf32, #tpu.memory_space<vmem>>, vector<2x32xf32>
    tpu.vector_store %arg5[%c2, %c0_55], %158 {strides = array<i32>} : memref<16x32xf32, #tpu.memory_space<vmem>>, vector<2x32xf32>,
    %c2_56 = arith.constant 2 : index
    %c0_57 = arith.constant 0 : index
    %160 = vector.load %arg6[%c2_56, %c0_57] : memref<16x32xf32, #tpu.memory_space<vmem>>, vector<2x32xf32>
    tpu.vector_store %arg6[%c2_56, %c0_57], %157 {strides = array<i32>} : memref<16x32xf32, #tpu.memory_space<vmem>>, vector<2x32xf32>,
    %161 = vector.extract_strided_slice %73 {offsets = [4, 0], sizes = [2, 32], strides = [1, 1]} : vector<16x32xf32> to vector<2x32xf32>
    %162 = arith.addf %143, %161 : vector<2x32xf32>
    %163 = vector.extract_strided_slice %97 {offsets = [4, 0], sizes = [2, 32], strides = [1, 1]} : vector<16x32xf32> to vector<2x32xf32>
    %164 = arith.subf %163, %162 : vector<2x32xf32>
    %165 = arith.subf %152, %164 : vector<2x32xf32>
    %166 = math.absf %165 : vector<2x32xf32>
    %cst_58 = arith.constant 0.000000e+00 : f32
    %167 = vector.broadcast %cst_58 : f32 to vector<2x32xf32>
    %168 = arith.subf %167, %166 : vector<2x32xf32>
    %169 = math.exp %168 : vector<2x32xf32>
    %170 = arith.cmpf oge, %152, %164 : vector<2x32xf32>
    %171 = arith.select %170, %152, %164 : vector<2x32xi1>, vector<2x32xf32>
    %172 = arith.addf %157, %169 : vector<2x32xf32>
    %173 = arith.mulf %157, %169 : vector<2x32xf32>
    %cst_59 = arith.constant 1.000000e+00 : f32
    %174 = vector.broadcast %cst_59 : f32 to vector<2x32xf32>
    %175 = arith.addf %173, %174 : vector<2x32xf32>
    %176 = arith.select %170, %172, %175 : vector<2x32xi1>, vector<2x32xf32>
    %177 = arith.addf %162, %171 : vector<2x32xf32>
    %c4 = arith.constant 4 : index
    %c0_60 = arith.constant 0 : index
    %178 = vector.load %arg5[%c4, %c0_60] : memref<16x32xf32, #tpu.memory_space<vmem>>, vector<2x32xf32>
    tpu.vector_store %arg5[%c4, %c0_60], %177 {strides = array<i32>} : memref<16x32xf32, #tpu.memory_space<vmem>>, vector<2x32xf32>,
    %c4_61 = arith.constant 4 : index
    %c0_62 = arith.constant 0 : index
    %179 = vector.load %arg6[%c4_61, %c0_62] : memref<16x32xf32, #tpu.memory_space<vmem>>, vector<2x32xf32>
    tpu.vector_store %arg6[%c4_61, %c0_62], %176 {strides = array<i32>} : memref<16x32xf32, #tpu.memory_space<vmem>>, vector<2x32xf32>,
    %180 = vector.extract_strided_slice %73 {offsets = [6, 0], sizes = [2, 32], strides = [1, 1]} : vector<16x32xf32> to vector<2x32xf32>
    %181 = arith.addf %162, %180 : vector<2x32xf32>
    %182 = vector.extract_strided_slice %97 {offsets = [6, 0], sizes = [2, 32], strides = [1, 1]} : vector<16x32xf32> to vector<2x32xf32>
    %183 = arith.subf %182, %181 : vector<2x32xf32>
    %184 = arith.subf %171, %183 : vector<2x32xf32>
    %185 = math.absf %184 : vector<2x32xf32>
    %cst_63 = arith.constant 0.000000e+00 : f32
    %186 = vector.broadcast %cst_63 : f32 to vector<2x32xf32>
    %187 = arith.subf %186, %185 : vector<2x32xf32>
    %188 = math.exp %187 : vector<2x32xf32>
    %189 = arith.cmpf oge, %171, %183 : vector<2x32xf32>
    %190 = arith.select %189, %171, %183 : vector<2x32xi1>, vector<2x32xf32>
    %191 = arith.addf %176, %188 : vector<2x32xf32>
    %192 = arith.mulf %176, %188 : vector<2x32xf32>
    %cst_64 = arith.constant 1.000000e+00 : f32
    %193 = vector.broadcast %cst_64 : f32 to vector<2x32xf32>
    %194 = arith.addf %192, %193 : vector<2x32xf32>
    %195 = arith.select %189, %191, %194 : vector<2x32xi1>, vector<2x32xf32>
    %196 = arith.addf %181, %190 : vector<2x32xf32>
    %c6 = arith.constant 6 : index
    %c0_65 = arith.constant 0 : index
    %197 = vector.load %arg5[%c6, %c0_65] : memref<16x32xf32, #tpu.memory_space<vmem>>, vector<2x32xf32>
    tpu.vector_store %arg5[%c6, %c0_65], %196 {strides = array<i32>} : memref<16x32xf32, #tpu.memory_space<vmem>>, vector<2x32xf32>,
    %c6_66 = arith.constant 6 : index
    %c0_67 = arith.constant 0 : index
    %198 = vector.load %arg6[%c6_66, %c0_67] : memref<16x32xf32, #tpu.memory_space<vmem>>, vector<2x32xf32>
    tpu.vector_store %arg6[%c6_66, %c0_67], %195 {strides = array<i32>} : memref<16x32xf32, #tpu.memory_space<vmem>>, vector<2x32xf32>,
    %199 = vector.extract_strided_slice %73 {offsets = [8, 0], sizes = [2, 32], strides = [1, 1]} : vector<16x32xf32> to vector<2x32xf32>
    %200 = arith.addf %181, %199 : vector<2x32xf32>
    %201 = vector.extract_strided_slice %97 {offsets = [8, 0], sizes = [2, 32], strides = [1, 1]} : vector<16x32xf32> to vector<2x32xf32>
    %202 = arith.subf %201, %200 : vector<2x32xf32>
    %203 = arith.subf %190, %202 : vector<2x32xf32>
    %204 = math.absf %203 : vector<2x32xf32>
    %cst_68 = arith.constant 0.000000e+00 : f32
    %205 = vector.broadcast %cst_68 : f32 to vector<2x32xf32>
    %206 = arith.subf %205, %204 : vector<2x32xf32>
    %207 = math.exp %206 : vector<2x32xf32>
    %208 = arith.cmpf oge, %190, %202 : vector<2x32xf32>
    %209 = arith.select %208, %190, %202 : vector<2x32xi1>, vector<2x32xf32>
    %210 = arith.addf %195, %207 : vector<2x32xf32>
    %211 = arith.mulf %195, %207 : vector<2x32xf32>
    %cst_69 = arith.constant 1.000000e+00 : f32
    %212 = vector.broadcast %cst_69 : f32 to vector<2x32xf32>
    %213 = arith.addf %211, %212 : vector<2x32xf32>
    %214 = arith.select %208, %210, %213 : vector<2x32xi1>, vector<2x32xf32>
    %215 = arith.addf %200, %209 : vector<2x32xf32>
    %c8 = arith.constant 8 : index
    %c0_70 = arith.constant 0 : index
    %216 = vector.load %arg5[%c8, %c0_70] : memref<16x32xf32, #tpu.memory_space<vmem>>, vector<2x32xf32>
    tpu.vector_store %arg5[%c8, %c0_70], %215 {strides = array<i32>} : memref<16x32xf32, #tpu.memory_space<vmem>>, vector<2x32xf32>,
    %c8_71 = arith.constant 8 : index
    %c0_72 = arith.constant 0 : index
    %217 = vector.load %arg6[%c8_71, %c0_72] : memref<16x32xf32, #tpu.memory_space<vmem>>, vector<2x32xf32>
    tpu.vector_store %arg6[%c8_71, %c0_72], %214 {strides = array<i32>} : memref<16x32xf32, #tpu.memory_space<vmem>>, vector<2x32xf32>,
    %218 = vector.extract_strided_slice %73 {offsets = [10, 0], sizes = [2, 32], strides = [1, 1]} : vector<16x32xf32> to vector<2x32xf32>
    %219 = arith.addf %200, %218 : vector<2x32xf32>
    %220 = vector.extract_strided_slice %97 {offsets = [10, 0], sizes = [2, 32], strides = [1, 1]} : vector<16x32xf32> to vector<2x32xf32>
    %221 = arith.subf %220, %219 : vector<2x32xf32>
    %222 = arith.subf %209, %221 : vector<2x32xf32>
    %223 = math.absf %222 : vector<2x32xf32>
    %cst_73 = arith.constant 0.000000e+00 : f32
    %224 = vector.broadcast %cst_73 : f32 to vector<2x32xf32>
    %225 = arith.subf %224, %223 : vector<2x32xf32>
    %226 = math.exp %225 : vector<2x32xf32>
    %227 = arith.cmpf oge, %209, %221 : vector<2x32xf32>
    %228 = arith.select %227, %209, %221 : vector<2x32xi1>, vector<2x32xf32>
    %229 = arith.addf %214, %226 : vector<2x32xf32>
    %230 = arith.mulf %214, %226 : vector<2x32xf32>
    %cst_74 = arith.constant 1.000000e+00 : f32
    %231 = vector.broadcast %cst_74 : f32 to vector<2x32xf32>
    %232 = arith.addf %230, %231 : vector<2x32xf32>
    %233 = arith.select %227, %229, %232 : vector<2x32xi1>, vector<2x32xf32>
    %234 = arith.addf %219, %228 : vector<2x32xf32>
    %c10 = arith.constant 10 : index
    %c0_75 = arith.constant 0 : index
    %235 = vector.load %arg5[%c10, %c0_75] : memref<16x32xf32, #tpu.memory_space<vmem>>, vector<2x32xf32>
    tpu.vector_store %arg5[%c10, %c0_75], %234 {strides = array<i32>} : memref<16x32xf32, #tpu.memory_space<vmem>>, vector<2x32xf32>,
    %c10_76 = arith.constant 10 : index
    %c0_77 = arith.constant 0 : index
    %236 = vector.load %arg6[%c10_76, %c0_77] : memref<16x32xf32, #tpu.memory_space<vmem>>, vector<2x32xf32>
    tpu.vector_store %arg6[%c10_76, %c0_77], %233 {strides = array<i32>} : memref<16x32xf32, #tpu.memory_space<vmem>>, vector<2x32xf32>,
    %237 = vector.extract_strided_slice %73 {offsets = [12, 0], sizes = [2, 32], strides = [1, 1]} : vector<16x32xf32> to vector<2x32xf32>
    %238 = arith.addf %219, %237 : vector<2x32xf32>
    %239 = vector.extract_strided_slice %97 {offsets = [12, 0], sizes = [2, 32], strides = [1, 1]} : vector<16x32xf32> to vector<2x32xf32>
    %240 = arith.subf %239, %238 : vector<2x32xf32>
    %241 = arith.subf %228, %240 : vector<2x32xf32>
    %242 = math.absf %241 : vector<2x32xf32>
    %cst_78 = arith.constant 0.000000e+00 : f32
    %243 = vector.broadcast %cst_78 : f32 to vector<2x32xf32>
    %244 = arith.subf %243, %242 : vector<2x32xf32>
    %245 = math.exp %244 : vector<2x32xf32>
    %246 = arith.cmpf oge, %228, %240 : vector<2x32xf32>
    %247 = arith.select %246, %228, %240 : vector<2x32xi1>, vector<2x32xf32>
    %248 = arith.addf %233, %245 : vector<2x32xf32>
    %249 = arith.mulf %233, %245 : vector<2x32xf32>
    %cst_79 = arith.constant 1.000000e+00 : f32
    %250 = vector.broadcast %cst_79 : f32 to vector<2x32xf32>
    %251 = arith.addf %249, %250 : vector<2x32xf32>
    %252 = arith.select %246, %248, %251 : vector<2x32xi1>, vector<2x32xf32>
    %253 = arith.addf %238, %247 : vector<2x32xf32>
    %c12 = arith.constant 12 : index
    %c0_80 = arith.constant 0 : index
    %254 = vector.load %arg5[%c12, %c0_80] : memref<16x32xf32, #tpu.memory_space<vmem>>, vector<2x32xf32>
    tpu.vector_store %arg5[%c12, %c0_80], %253 {strides = array<i32>} : memref<16x32xf32, #tpu.memory_space<vmem>>, vector<2x32xf32>,
    %c12_81 = arith.constant 12 : index
    %c0_82 = arith.constant 0 : index
    %255 = vector.load %arg6[%c12_81, %c0_82] : memref<16x32xf32, #tpu.memory_space<vmem>>, vector<2x32xf32>
    tpu.vector_store %arg6[%c12_81, %c0_82], %252 {strides = array<i32>} : memref<16x32xf32, #tpu.memory_space<vmem>>, vector<2x32xf32>,
    %256 = vector.extract_strided_slice %73 {offsets = [14, 0], sizes = [2, 32], strides = [1, 1]} : vector<16x32xf32> to vector<2x32xf32>
    %257 = arith.addf %238, %256 : vector<2x32xf32>
    %258 = vector.extract_strided_slice %97 {offsets = [14, 0], sizes = [2, 32], strides = [1, 1]} : vector<16x32xf32> to vector<2x32xf32>
    %259 = arith.subf %258, %257 : vector<2x32xf32>
    %260 = arith.subf %247, %259 : vector<2x32xf32>
    %261 = math.absf %260 : vector<2x32xf32>
    %cst_83 = arith.constant 0.000000e+00 : f32
    %262 = vector.broadcast %cst_83 : f32 to vector<2x32xf32>
    %263 = arith.subf %262, %261 : vector<2x32xf32>
    %264 = math.exp %263 : vector<2x32xf32>
    %265 = arith.cmpf oge, %247, %259 : vector<2x32xf32>
    %266 = arith.select %265, %247, %259 : vector<2x32xi1>, vector<2x32xf32>
    %267 = arith.addf %252, %264 : vector<2x32xf32>
    %268 = arith.mulf %252, %264 : vector<2x32xf32>
    %cst_84 = arith.constant 1.000000e+00 : f32
    %269 = vector.broadcast %cst_84 : f32 to vector<2x32xf32>
    %270 = arith.addf %268, %269 : vector<2x32xf32>
    %271 = arith.select %265, %267, %270 : vector<2x32xi1>, vector<2x32xf32>
    %272 = arith.addf %257, %266 : vector<2x32xf32>
    %c14 = arith.constant 14 : index
    %c0_85 = arith.constant 0 : index
    %273 = vector.load %arg5[%c14, %c0_85] : memref<16x32xf32, #tpu.memory_space<vmem>>, vector<2x32xf32>
    tpu.vector_store %arg5[%c14, %c0_85], %272 {strides = array<i32>} : memref<16x32xf32, #tpu.memory_space<vmem>>, vector<2x32xf32>,
    %c14_86 = arith.constant 14 : index
    %c0_87 = arith.constant 0 : index
    %274 = vector.load %arg6[%c14_86, %c0_87] : memref<16x32xf32, #tpu.memory_space<vmem>>, vector<2x32xf32>
    tpu.vector_store %arg6[%c14_86, %c0_87], %271 {strides = array<i32>} : memref<16x32xf32, #tpu.memory_space<vmem>>, vector<2x32xf32>,
    %275 = arith.addf %257, %266 : vector<2x32xf32>
    %276 = math.exp %275 : vector<2x32xf32>
    %277 = arith.mulf %276, %271 : vector<2x32xf32>
    %c0_88 = arith.constant 0 : index
    %c0_89 = arith.constant 0 : index
    %278 = vector.load %arg4[%c0_88, %c0_89] : memref<2x32xf32, #tpu.memory_space<vmem>>, vector<2x32xf32>
    tpu.vector_store %arg4[%c0_88, %c0_89], %277 {strides = array<i32>} : memref<2x32xf32, #tpu.memory_space<vmem>>, vector<2x32xf32>,
    %c0_90 = arith.constant 0 : index
    %c0_91 = arith.constant 0 : index
    %279 = vector.load %arg5[%c0_90, %c0_91] : memref<16x32xf32, #tpu.memory_space<vmem>>, vector<16x32xf32>
    %280 = math.exp %279 : vector<16x32xf32>
    %c0_92 = arith.constant 0 : index
    %c0_93 = arith.constant 0 : index
    %281 = vector.load %arg6[%c0_92, %c0_93] : memref<16x32xf32, #tpu.memory_space<vmem>>, vector<16x32xf32>
    %282 = arith.mulf %280, %281 : vector<16x32xf32>
    %c32 = arith.constant 32 : index
    %c0_94 = arith.constant 0 : index
    %283 = vector.load %arg2[%c32, %c0_94] : memref<360x128xf32, #tpu.memory_space<vmem>>, vector<32x32xf32>
    %cst_95 = arith.constant dense<0.000000e+00> : vector<16x32xf32>
    %284 = tpu.matmul %282, %283, %cst_95 {dimension_numbers = #tpu.dot_dimension_numbers<[1], [0], [0], [1], [0, 0, 1, 1], [], []>} : vector<16x32xf32>, vector<32x32xf32>, vector<16x32xf32> -> vector<16x32xf32>
    %285 = vector.broadcast %3 : vector<1x32xf32> to vector<16x32xf32>
    %286 = arith.addf %284, %285 : vector<16x32xf32>
    %287 = arith.addf %29, %286 : vector<16x32xf32>
    %cst_96 = arith.constant dense<0.000000e+00> : vector<16xf32>
    %288 = vector.multi_reduction <add>, %287, %cst_96 [1] : vector<16x32xf32> to vector<16xf32>
    %289 = vector.shape_cast %288 : vector<16xf32> to vector<16x1xf32>
    %290 = arith.mulf %287, %287 : vector<16x32xf32>
    %cst_97 = arith.constant dense<0.000000e+00> : vector<16xf32>
    %291 = vector.multi_reduction <add>, %290, %cst_97 [1] : vector<16x32xf32> to vector<16xf32>
    %292 = vector.shape_cast %291 : vector<16xf32> to vector<16x1xf32>
    %cst_98 = arith.constant 3.125000e-02 : f32
    %293 = vector.broadcast %cst_98 : f32 to vector<16x1xf32>
    %294 = arith.mulf %289, %293 : vector<16x1xf32>
    %cst_99 = arith.constant 3.125000e-02 : f32
    %295 = vector.broadcast %cst_99 : f32 to vector<16x1xf32>
    %296 = arith.mulf %292, %295 : vector<16x1xf32>
    %297 = arith.mulf %294, %294 : vector<16x1xf32>
    %298 = arith.subf %296, %297 : vector<16x1xf32>
    %299 = vector.broadcast %294 : vector<16x1xf32> to vector<16x32xf32>
    %300 = arith.subf %287, %299 : vector<16x32xf32>
    %cst_100 = arith.constant 9.99999974E-6 : f32
    %301 = vector.broadcast %cst_100 : f32 to vector<16x1xf32>
    %302 = arith.addf %298, %301 : vector<16x1xf32>
    %303 = math.rsqrt %302 : vector<16x1xf32>
    %304 = vector.broadcast %303 : vector<16x1xf32> to vector<16x32xf32>
    %305 = arith.mulf %300, %304 : vector<16x32xf32>
    %306 = vector.broadcast %1 : vector<1x32xf32> to vector<16x32xf32>
    %307 = arith.mulf %305, %306 : vector<16x32xf32>
    %308 = vector.broadcast %2 : vector<1x32xf32> to vector<16x32xf32>
    %309 = arith.addf %307, %308 : vector<16x32xf32>
    %310 = tpu.iota {dimensions = array<i32: 0>} : vector<16x32xi32>
    %c2_i32 = arith.constant 2 : i32
    %311 = vector.broadcast %c2_i32 : i32 to vector<16x32xi32>
    %312 = arith.cmpi sge, %310, %311 : vector<16x32xi32>
    %c2_i32_101 = arith.constant 2 : i32
    %313 = tpu.dynamic_rotate %309 by %c2_i32_101 dim 0 : vector<16x32xf32>, i32 -> vector<16x32xf32>
    %cst_102 = arith.constant 0.000000e+00 : f32
    %314 = vector.broadcast %cst_102 : f32 to vector<16x32xf32>
    %315 = arith.select %312, %313, %314 : vector<16x32xi1>, vector<16x32xf32>
    %c14_i32 = arith.constant 14 : i32
    %316 = vector.broadcast %c14_i32 : i32 to vector<16x32xi32>
    %317 = arith.cmpi slt, %310, %316 : vector<16x32xi32>
    %c14_i32_103 = arith.constant 14 : i32
    %318 = tpu.dynamic_rotate %309 by %c14_i32_103 dim 0 : vector<16x32xf32>, i32 -> vector<16x32xf32>
    %cst_104 = arith.constant 0.000000e+00 : f32
    %319 = vector.broadcast %cst_104 : f32 to vector<16x32xf32>
    %320 = arith.select %317, %318, %319 : vector<16x32xi1>, vector<16x32xf32>
    %c12_i32 = arith.constant 12 : i32
    %321 = vector.broadcast %c12_i32 : i32 to vector<16x32xi32>
    %322 = arith.cmpi slt, %310, %321 : vector<16x32xi32>
    %c12_i32_105 = arith.constant 12 : i32
    %323 = tpu.dynamic_rotate %309 by %c12_i32_105 dim 0 : vector<16x32xf32>, i32 -> vector<16x32xf32>
    %cst_106 = arith.constant 0.000000e+00 : f32
    %324 = vector.broadcast %cst_106 : f32 to vector<16x32xf32>
    %325 = arith.select %322, %323, %324 : vector<16x32xi1>, vector<16x32xf32>
    %326 = tpu.concatenate %315, %309, %320, %325 in 1 : vector<16x32xf32>, vector<16x32xf32>, vector<16x32xf32>, vector<16x32xf32> -> vector<16x128xf32>
    %c64 = arith.constant 64 : index
    %c0_107 = arith.constant 0 : index
    %327 = vector.load %arg2[%c64, %c0_107] : memref<360x128xf32, #tpu.memory_space<vmem>>, vector<128x32xf32>
    %cst_108 = arith.constant dense<0.000000e+00> : vector<16x32xf32>
    %328 = tpu.matmul %326, %327, %cst_108 {dimension_numbers = #tpu.dot_dimension_numbers<[1], [0], [0], [1], [0, 0, 1, 1], [], []>} : vector<16x128xf32>, vector<128x32xf32>, vector<16x32xf32> -> vector<16x32xf32>
    %329 = vector.broadcast %4 : vector<1x32xf32> to vector<16x32xf32>
    %330 = arith.addf %328, %329 : vector<16x32xf32>
    %331 = arith.addf %309, %330 : vector<16x32xf32>
    %cst_109 = arith.constant dense<0.000000e+00> : vector<16xf32>
    %332 = vector.multi_reduction <add>, %331, %cst_109 [1] : vector<16x32xf32> to vector<16xf32>
    %333 = vector.shape_cast %332 : vector<16xf32> to vector<16x1xf32>
    %334 = arith.mulf %331, %331 : vector<16x32xf32>
    %cst_110 = arith.constant dense<0.000000e+00> : vector<16xf32>
    %335 = vector.multi_reduction <add>, %334, %cst_110 [1] : vector<16x32xf32> to vector<16xf32>
    %336 = vector.shape_cast %335 : vector<16xf32> to vector<16x1xf32>
    %cst_111 = arith.constant 3.125000e-02 : f32
    %337 = vector.broadcast %cst_111 : f32 to vector<16x1xf32>
    %338 = arith.mulf %333, %337 : vector<16x1xf32>
    %cst_112 = arith.constant 3.125000e-02 : f32
    %339 = vector.broadcast %cst_112 : f32 to vector<16x1xf32>
    %340 = arith.mulf %336, %339 : vector<16x1xf32>
    %341 = arith.mulf %338, %338 : vector<16x1xf32>
    %342 = arith.subf %340, %341 : vector<16x1xf32>
    %343 = vector.broadcast %338 : vector<16x1xf32> to vector<16x32xf32>
    %344 = arith.subf %331, %343 : vector<16x32xf32>
    %cst_113 = arith.constant 9.99999974E-6 : f32
    %345 = vector.broadcast %cst_113 : f32 to vector<16x1xf32>
    %346 = arith.addf %342, %345 : vector<16x1xf32>
    %347 = math.rsqrt %346 : vector<16x1xf32>
    %348 = vector.broadcast %347 : vector<16x1xf32> to vector<16x32xf32>
    %349 = arith.mulf %344, %348 : vector<16x32xf32>
    %350 = vector.broadcast %1 : vector<1x32xf32> to vector<16x32xf32>
    %351 = arith.mulf %349, %350 : vector<16x32xf32>
    %352 = vector.broadcast %2 : vector<1x32xf32> to vector<16x32xf32>
    %353 = arith.addf %351, %352 : vector<16x32xf32>
    %c320 = arith.constant 320 : index
    %c0_114 = arith.constant 0 : index
    %354 = vector.load %arg2[%c320, %c0_114] : memref<360x128xf32, #tpu.memory_space<vmem>>, vector<32x128xf32>
    %cst_115 = arith.constant dense<0.000000e+00> : vector<16x128xf32>
    %355 = tpu.matmul %353, %354, %cst_115 {dimension_numbers = #tpu.dot_dimension_numbers<[1], [0], [0], [1], [0, 0, 1, 1], [], []>} : vector<16x32xf32>, vector<32x128xf32>, vector<16x128xf32> -> vector<16x128xf32>
    %356 = vector.broadcast %7 : vector<1x128xf32> to vector<16x128xf32>
    %357 = arith.addf %355, %356 : vector<16x128xf32>
    %cst_116 = arith.constant 0.000000e+00 : f32
    %358 = vector.broadcast %cst_116 : f32 to vector<16x128xf32>
    %359 = arith.maximumf %357, %358 : vector<16x128xf32>
    %c192 = arith.constant 192 : index
    %c0_117 = arith.constant 0 : index
    %360 = vector.load %arg2[%c192, %c0_117] : memref<360x128xf32, #tpu.memory_space<vmem>>, vector<128x32xf32>
    %cst_118 = arith.constant dense<0.000000e+00> : vector<16x32xf32>
    %361 = tpu.matmul %359, %360, %cst_118 {dimension_numbers = #tpu.dot_dimension_numbers<[1], [0], [0], [1], [0, 0, 1, 1], [], []>} : vector<16x128xf32>, vector<128x32xf32>, vector<16x32xf32> -> vector<16x32xf32>
    %362 = vector.broadcast %6 : vector<1x32xf32> to vector<16x32xf32>
    %363 = arith.addf %361, %362 : vector<16x32xf32>
    %364 = arith.addf %353, %363 : vector<16x32xf32>
    %c0_119 = arith.constant 0 : index
    %c0_120 = arith.constant 0 : index
    %365 = vector.load %arg3[%c0_119, %c0_120] : memref<16x32xf32, #tpu.memory_space<vmem>>, vector<16x32xf32>
    tpu.vector_store %arg3[%c0_119, %c0_120], %364 {strides = array<i32>} : memref<16x32xf32, #tpu.memory_space<vmem>>, vector<16x32xf32>,
    return
  }
}

</mosaic_0001>

<bundles_post_ra>
// kernel: tpu_custom_call.1
= control target key start
LH: loop header
LB: loop body
LE: loop exit
PB: predicated region body
PF: predicated region fallthrough
CT: control target
= control target key end

     0   :  { %10 = vsyncpa [#allocation5], 0  ;;  %s1752_s0 = inlined_call_operand.hbm [shape: f32[16,32], index: 0, kind: input, shape index: {}]   ;;  %s1753_s1 = inlined_call_operand.vmem [shape: f32[2,32], index: 1, kind: input, shape index: {}]   ;;  %s1754_s2 = inlined_call_operand.hbm [shape: f32[360,128], index: 2, kind: input, shape index: {}]   ;;  %s1755_s3 = inlined_call_operand.hbm [shape: f32[16,32], index: 3, kind: output, shape index: {0}]   ;;  %s1756_s4 = inlined_call_operand.hbm [shape: f32[2,32], index: 4, kind: output, shape index: {1}]  }
   0x1   :  { %11 = vsyncpa [#allocation8], 0 }
   0x2   :  { %12 = vsyncpa [#allocation6], 0 }
   0x3   :  { %13 = vsyncpa [#allocation11], 0  ;;  %s1449_s15 = smov [#allocation4]   ;;  %s1353_s19 = scalar_lea.hbm %s1752_s0, 256 }
   0x4   :  { %s19_s16 = sshll.u32 %s1449_s15, 4  ;;  %p1354_p0 = scmp.ne.s32.totalorder %s1752_s0, %s1353_s19  ;;  %s20_s16 = int_to_ptr.vmem [resolvable:$true] %s19_s16 }
   0x5   :  { %p1357_p1 = scmp.lt.u32.totalorder %s1353_s19, %s1752_s0 }
   0x7   :  { %p1359_p2 = pnand %p1357_p1, %p1354_p0 }
   0x9   :  { %1362 = shalt.err (!%p1359_p2)
}
   0xa   :  { %s1363_s24 = scalar_lea.vmem %s20_s16, 256  ;;  %p1368_p4 = scmp.lt.s32.totalorder %s20_s16, %s20_s16 }
   0xb   :  { %p1364_p3 = scmp.ne.s32.totalorder %s20_s16, %s1363_s24  ;;  %p1369_p5 = scmp.lt.s32.totalorder %s1363_s24, %s1363_s24 }
   0xd   :  { %p1370_p6 = por %p1369_p5, %p1368_p4 }
   0xf   :  { %p1371_p7 = pnand %p1370_p6, %p1364_p3 }
  0x11   :  { %1374 = shalt.err (!%p1371_p7)
}
  0x12   :  { %s1450_s25 = smov 128   ;;  %s1451_s26 = smov 8  }
  0x13   :  { %25 = dma.hbm_to_vmem [thread:$0]  %s1752_s0, 256, %s20_s16, [#allocation5], %s1450_s25, %s1450_s25, %s1451_s26  }
  0x14   :  { %s1452_s29 = smov [#allocation7]   ;;  %s1375_s7 = scalar_lea.hbm %s1754_s2, 5760 }
  0x15   :  { %s33_s30 = sshll.u32 %s1452_s29, 4  ;;  %p1376_p8 = scmp.ne.s32.totalorder %s1754_s2, %s1375_s7  ;;  %s34_s30 = int_to_ptr.vmem [resolvable:$true] %s33_s30 }
  0x16   :  { %p1379_p9 = scmp.lt.u32.totalorder %s1375_s7, %s1754_s2 }
  0x18   :  { %p1381_p10 = pnand %p1379_p9, %p1376_p8 }
  0x1a   :  { %1384 = shalt.err (!%p1381_p10)
}
  0x1b   :  { %s1385_s12 = scalar_lea.vmem %s34_s30, 5760  ;;  %p1390_p12 = scmp.lt.s32.totalorder %s34_s30, %s34_s30 }
  0x1c   :  { %p1386_p11 = scmp.ne.s32.totalorder %s34_s30, %s1385_s12  ;;  %p1391_p13 = scmp.lt.s32.totalorder %s1385_s12, %s1385_s12 }
  0x1e   :  { %p1392_p0 = por %p1391_p13, %p1390_p12 }
  0x20   :  { %p1393_p1 = pnand %p1392_p0, %p1386_p11 }
  0x22   :  { %1396 = shalt.err (!%p1393_p1)
}
  0x23   :  { %39 = dma.hbm_to_vmem [thread:$0]  %s1754_s2, 5760, %s34_s30, [#allocation8], %s1450_s25, %s1450_s25, %s1451_s26  }
  0x24   :  { %1441 = dma.done.wait [#allocation5], 256  }
  0x25   :  { %1442 = vsyncadd [#allocation5], 4294967040 }
  0x26   :  { %1443 = dma.done.wait [#allocation8], 5760  }
  0x27   :  { %1444 = vsyncadd [#allocation8], 4294961536  ;;  %vm55_vm0 = vcmask 261120   ;;  %v46_v0 = vld [vmem:[#allocation4] sm:$0xff]  ;;  %v47_v1 = vld [vmem:[#allocation4 + $0x8] sm:$0xff]  ;;  %s1453_s2 = smov 96  }
  0x28   :  { %v56_v2 = vsel %vm55_vm0, %v46_v0, 0.0  ;;  %v62_v3 = vmul.f32 %v46_v0, %v46_v0  ;;  %v63_v4 = vmul.f32 %v47_v1, %v47_v1  ;;  %v59_v6 = vsel %vm55_vm0, %v47_v1, 0.0  ;;  %v98_v8 = vld [vmem:[#allocation7] sm:$0xff]  ;;  %v99_v9 = vld [vmem:[#allocation7 + $0x8] sm:$0xff]  ;;  %v100_v10 = vld [vmem:[#allocation7 + $0x10] sm:$0xff]  ;;  %s1454_s14 = smov 64  }
  0x29   :  { %57 = vadd.xlane.f32.xlu0 %v56_v2  ;;  %v1181_v11 = vpack.c.bf16 %v99_v9, %v98_v8  ;;  %v101_v12 = vld [vmem:[#allocation7 + $0x18] sm:$0xff]  ;;  %v1517_v30 = vld [vmem:[#allocation7 + $0x160] ss:$0 sm:$0xff]  ;;  %v1519_v32 = vld [vmem:[#allocation7 + $0x161] ss:$0 sm:$0xff]  ;;  %vm292_vm5 = vcmask 254976  }
  0x2a   :  { %v64_v5 = vsel %vm55_vm0, %v62_v3, 0.0  ;;  %v67_v7 = vsel %vm55_vm0, %v63_v4, 0.0  ;;  %v1185_v13 = vpack.c.bf16 %v101_v12, %v100_v10  ;;  %v1013_v40 = vld [vmem:[#allocation7 + $0x164] ss:$0 sm:$0xff]  ;;  %s1456_s17 = smov [#allocation10]  }
  0x2b   :  { %65 = vadd.xlane.f32.xlu1 %v64_v5  ;;  %1182 = vmatprep.subr.bf16.mxu0 %v1181_v11  ;;  %s997_s18 = sshll.u32 %s1456_s17, 4  ;;  %s998_s18 = int_to_ptr.vmem [resolvable:$true] %s997_s18 }
  0x2c   :  { %1184 = vmatpush3.bf16.msra.mxu0 %v1181_v11  ;;  %s1397_s19 = scalar_lea.vmem %s998_s18, 32  ;;  %p1402_p3 = scmp.lt.s32.totalorder %s998_s18, %s998_s18 }
  0x2d   :  { %60 = vadd.xlane.f32.xlu0 %v59_v6  ;;  %1186 = vmatprep.subr.bf16.mxu0 %v1185_v13  ;;  %p1398_p2 = scmp.ne.s32.totalorder %s998_s18, %s1397_s19  ;;  %p1403_p4 = scmp.lt.s32.totalorder %s1397_s19, %s1397_s19 }
  0x2f   :  { %68 = vadd.xlane.f32.xlu1 %v67_v7  ;;  %p1404_p5 = por %p1403_p4, %p1402_p3 }
  0x30   :  { %1188 = vmatpush3.bf16.msra.mxu0 %v1185_v13  ;;  %v471_v13 = vld [vmem:[#allocation7 + $0x20] sm:$0xff] }
  0x31   :  { %p1405_p6 = pnand %p1404_p5, %p1398_p2 }
  0xb6   :  { %v58_v14 = vpop.xlane.xlu0 %57 }
  0xb7   :  { %v70_v15 = vmul.f32 0.03125, %v58_v14  ;;  %v472_v14 = vld [vmem:[#allocation7 + $0x28] sm:$0xff] }
  0xb8   :  { %v66_v16 = vpop.xlane.xlu1 %65 }
  0xb9   :  { %v74_v17 = vmul.f32 %v70_v15, %v70_v15  ;;  %v72_v18 = vmul.f32 0.03125, %v66_v16  ;;  %v78_v28 = vsub.f32 %v46_v0, %v70_v15  ;;  %v473_v15 = vld [vmem:[#allocation7 + $0x30] sm:$0xff]  ;;  %v1189_v16 = vpack.c.bf16 %v472_v14, %v471_v13 }
  0xba   :  { %v61_v19 = vpop.xlane.xlu0 %60 }
  0xbb   :  { %v76_v20 = vsub.f32 %v72_v18, %v74_v17  ;;  %v71_v21 = vmul.f32 0.03125, %v61_v19  ;;  %v474_v17 = vld [vmem:[#allocation7 + $0x38] sm:$0xff]  ;;  %1190 = vmatprep.subr.bf16.mxu1 %v1189_v16  ;;  %v263_v19 = vld [vmem:[%s1753_s1] sm:$0x3]  ;;  %s1455_s1 = smov 32  }
  0xbc   :  { %v69_v22 = vpop.xlane.xlu1 %68  ;;  %v1193_v18 = vpack.c.bf16 %v474_v17, %v473_v15  ;;  %1192 = vmatpush3.bf16.msra.mxu1 %v1189_v16  ;;  %vm264_vm3 = vcmp.ge.f32.partialorder %v263_v19, 0.0 }
  0xbd   :  { %v80_v23 = vadd.f32 1e-05, %v76_v20  ;;  %v75_v24 = vmul.f32 %v71_v21, %v71_v21  ;;  %v73_v25 = vmul.f32 0.03125, %v69_v22  ;;  %v79_v33 = vsub.f32 %v47_v1, %v71_v21 }
  0xbe   :  { %1194 = vmatprep.subr.bf16.mxu1 %v1193_v18  ;;  %v269_v20 = vsub.f32 0.0, %v263_v19 }
  0xbf   :  { %1293 = vrsqrt.f32 %v80_v23  ;;  %v77_v26 = vsub.f32 %v73_v25, %v75_v24 }
  0xc0   :  { %1196 = vmatpush3.bf16.msra.mxu1 %v1193_v18  ;;  %v271_v21 = vand.u32 2147483647, %v269_v20 }
  0xc1   :  { %v81_v27 = vadd.f32 1e-05, %v77_v26 }
  0xc2   :  { %v272_v22 = vsub.f32 0.0, %v271_v21 }
  0xc3   :  { %1295 = vrsqrt.f32 %v81_v27 }
  0xc4   :  { %v273_v23 = vmul.f32 1.442695, %v272_v22 }
  0xc9   :  { %v1294_v29 = vpop.eup %1293 }
  0xca   :  { %v84_v31 = vmul.f32 %v1294_v29, %v78_v28 }
  0xcc   :  { %v90_v34 = vmul.f32 %v1517_v30, %v84_v31 }
  0xcd   :  { %v1296_v35 = vpop.eup %1295 }
  0xce   :  { %v1523_v36 = vadd.f32 %v1519_v32, %v90_v34  ;;  %v85_v37 = vmul.f32 %v1296_v35, %v79_v33 }
  0xd0   :  { %1086 = vmatprep.mubr.msk.f32.mxu0 %vm55_vm0, %v1523_v36  ;;  %v91_v38 = vmul.f32 %v1517_v30, %v85_v37 }
  0xd2   :  { %v1529_v39 = vadd.f32 %v1519_v32, %v91_v38 }
  0xd4   :  { %1087 = vmatmul.mubr.msk.f32.vlgmr.msra.gmra.mrb[0].mxu0 %vm55_vm0, %v1529_v39 }
 0x1a7   :  { %v1088_v41 = vpop.f32.mrb[0].mxu0 }
 0x1a8   :  { %v184_v42 = vadd.f32 %v1088_v41, %v1013_v40  ;;  %v178_v43 = vpop.f32.mrb[1].mxu0 }
 0x1a9   :  { %v179_v44 = vadd.f32 %v1013_v40, %v178_v43  ;;  %v265_v40 = vmax.f32 %v263_v19, 0.0 }
 0x1aa   :  { %v188_v45 = vsub.f32 0.0, %v184_v42  ;;  %v242_v57 = vmax.f32 %v184_v42, 0.0  ;;  %vm240_vm2 = vcmp.ge.f32.partialorder %v184_v42, 0.0 }
 0x1ab   :  { %v187_v46 = vsub.f32 0.0, %v179_v44  ;;  %v241_v53 = vmax.f32 %v179_v44, 0.0  ;;  %vm239_vm1 = vcmp.ge.f32.partialorder %v179_v44, 0.0 }
 0x1ac   :  { %v192_v47 = vand.u32 2147483647, %v188_v45  ;;  %v244_v60 = vadd.f32 0.5, %v242_v57  ;;  %v190_v63 = vmax.f32 %v188_v45, 0.0  ;;  %v266_v45 = vadd.f32 0.5, %v265_v40 }
 0x1ad   :  { %v191_v48 = vand.u32 2147483647, %v187_v46  ;;  %v243_v58 = vadd.f32 0.5, %v241_v53  ;;  %v189_v1 = vmax.f32 %v187_v46, 0.0 }
 0x1ae   :  { %v194_v49 = vsub.f32 0.0, %v192_v47  ;;  %v270_v47 = vmax.f32 %v269_v20, 0.0 }
 0x1af   :  { %v193_v50 = vsub.f32 0.0, %v191_v48 }
 0x1b0   :  { %v197_v51 = vmul.f32 1.442695, %v194_v49 }
 0x1b1   :  { %v195_v52 = vmul.f32 1.442695, %v193_v50 }
 0x1b2   :  { %1297 = vpow2.f32 %v197_v51 }
 0x1b3   :  { %1299 = vpow2.f32 %v195_v52 }
 0x1bc   :  { %v1298_v54 = vpop.eup %1297 }
 0x1bd   :  { %v1300_v55 = vpop.eup %1299  ;;  %v200_v56 = vadd.f32 1.0, %v1298_v54 }
 0x1be   :  { %v199_v59 = vadd.f32 1.0, %v1300_v55 }
 0x1bf   :  { %1301 = vlog2.f32 %v200_v56 }
 0x1c0   :  { %1303 = vlog2.f32 %v199_v59 }
 0x1c1   :  { %1305 = vlog2.f32 %v243_v58 }
 0x1c2   :  { %1307 = vlog2.f32 %v244_v60 }
 0x1c3   :  { %1309 = vpow2.f32 %v273_v23 }
 0x1c9   :  { %v1302_v61 = vpop.eup %1301 }
 0x1ca   :  { %v1304_v62 = vpop.eup %1303  ;;  %v204_v0 = vmul.f32 0.6931472, %v1302_v61 }
 0x1cb   :  { %v202_v2 = vmul.f32 0.6931472, %v1304_v62  ;;  %v1306_v3 = vpop.eup %1305 }
 0x1cc   :  { %v206_v4 = vadd.f32 %v204_v0, %v190_v63  ;;  %v246_v6 = vmul.f32 0.6931472, %v1306_v3  ;;  %v1308_v8 = vpop.eup %1307 }
 0x1cd   :  { %v205_v5 = vadd.f32 %v202_v2, %v189_v1  ;;  %v248_v11 = vmul.f32 0.6931472, %v1308_v8  ;;  %v1310_v37 = vpop.eup %1309 }
 0x1ce   :  { %211 = vrot.lane.b32.xlu1 %v206_v4, %s1453_s2  ;;  %v250_v10 = vsub.f32 0.0, %v206_v4  ;;  %v275_v38 = vadd.f32 1.0, %v1310_v37 }
 0x1cf   :  { %209 = vrot.lane.b32.xlu0 %v205_v5, %s1453_s2  ;;  %v249_v7 = vsub.f32 0.0, %v205_v5 }
 0x1d0   :  { %v252_v12 = vsel %vm240_vm2, %v248_v11, %v250_v10 }
 0x1d1   :  { %v251_v9 = vsel %vm239_vm1, %v246_v6, %v249_v7 }
 0x1d2   :  { %255 = vrot.lane.b32.xlu1 %v251_v9, %s1454_s14 }
 0x1d6   :  { %257 = vrot.lane.b32.xlu1 %v252_v12, %s1454_s14 }
 0x240   :  { %v212_v24 = vpop.permute.xlu1 %211 }
 0x241   :  { %v216_v25 = vsub.f32 %v206_v4, %v212_v24  ;;  %v210_v26 = vpop.permute.xlu0 %209 }
 0x242   :  { %v215_v27 = vsub.f32 %v205_v5, %v210_v26 }
 0x243   :  { %v220_v28 = vand.u32 2147483647, %v216_v25  ;;  %v218_v54 = vmax.f32 %v216_v25, 0.0 }
 0x244   :  { %v219_v29 = vand.u32 2147483647, %v215_v27  ;;  %v217_v52 = vmax.f32 %v215_v27, 0.0  ;;  %v256_v1 = vpop.permute.xlu1 %255 }
 0x245   :  { %v222_v31 = vsub.f32 0.0, %v220_v28 }
 0x246   :  { %v221_v33 = vsub.f32 0.0, %v219_v29 }
 0x247   :  { %v225_v34 = vmul.f32 1.442695, %v222_v31 }
 0x248   :  { %v223_v35 = vmul.f32 1.442695, %v221_v33  ;;  %v258_v24 = vpop.permute.xlu1 %257 }
 0x249   :  { %1311 = vpow2.f32 %v225_v34 }
 0x24a   :  { %1313 = vpow2.f32 %v223_v35 }
 0x24b   :  { %1315 = vlog2.f32 %v275_v38 }
 0x253   :  { %v1312_v41 = vpop.eup %1311 }
 0x254   :  { %v1314_v42 = vpop.eup %1313  ;;  %v228_v43 = vadd.f32 1.0, %v1312_v41 }
 0x255   :  { %v227_v44 = vadd.f32 1.0, %v1314_v42  ;;  %v1316_v46 = vpop.eup %1315 }
 0x256   :  { %1317 = vlog2.f32 %v228_v43  ;;  %v277_v48 = vmul.f32 0.6931472, %v1316_v46 }
 0x257   :  { %1319 = vlog2.f32 %v227_v44 }
 0x258   :  { %1321 = vlog2.f32 %v266_v45  ;;  %v278_v55 = vadd.f32 %v277_v48, %v270_v47 }
 0x25a   :  { %v279_v61 = vsub.f32 0.0, %v278_v55 }
 0x260   :  { %v1318_v49 = vpop.eup %1317 }
 0x261   :  { %v1320_v50 = vpop.eup %1319  ;;  %v232_v51 = vmul.f32 0.6931472, %v1318_v49 }
 0x262   :  { %v230_v53 = vmul.f32 0.6931472, %v1320_v50  ;;  %v1322_v56 = vpop.eup %1321 }
 0x263   :  { %v234_v58 = vadd.f32 %v232_v51, %v218_v54  ;;  %v268_v60 = vmul.f32 0.6931472, %v1322_v56 }
 0x264   :  { %v233_v57 = vadd.f32 %v230_v53, %v217_v52 }
 0x265   :  { %v236_v0 = vsub.f32 0.0, %v234_v58  ;;  %v280_v5 = vsel %vm264_vm3, %v268_v60, %v279_v61 }
 0x266   :  { %v235_v59 = vsub.f32 0.0, %v233_v57 }
 0x267   :  { %v238_v10 = vadd.f32 %v236_v0, %v216_v25  ;;  %v385_v22 = vrot.slane %v236_v0, 2  ;;  %v409_v23 = vrot.slane %v236_v0, 4  ;;  %v433_v33 = vrot.slane %v236_v0, 6 }
 0x268   :  { %v237_v62 = vadd.f32 %v235_v59, %v215_v27  ;;  %v296_v63 = vrot.slane %v235_v59, 2  ;;  %v320_v3 = vrot.slane %v235_v59, 4  ;;  %v344_v8 = vrot.slane %v235_v59, 6 }
 0x269   :  { %v262_v28 = vadd.f32 %v258_v24, %v238_v10 }
 0x26a   :  { %v298_v2 = vadd.f32 %v296_v63, %v235_v59  ;;  %v261_v4 = vadd.f32 %v256_v1, %v237_v62 }
 0x26c   :  { %v300_v6 = vrot.slane %v298_v2, 6  ;;  %v322_v7 = vadd.f32 %v320_v3, %v298_v2  ;;  %v282_v9 = vsub.f32 %v261_v4, %v235_v59 }
 0x26e   :  { %v324_v11 = vrot.slane %v322_v7, 4  ;;  %v346_v12 = vadd.f32 %v344_v8, %v322_v7  ;;  %v283_v13 = vsub.f32 %v280_v5, %v282_v9  ;;  %vm288_vm4 = vcmp.ge.f32.partialorder %v280_v5, %v282_v9 }
 0x26f   :  { %v1540_v14 = vsel %vm288_vm4, %v280_v5, %v282_v9  ;;  %v302_v15 = vsub.f32 %v261_v4, %v300_v6  ;;  %vm652_vm4 = vcmask 523264  }
 0x270   :  { %v348_v16 = vrot.slane %v346_v12, 2  ;;  %v284_v17 = vand.u32 2147483647, %v283_v13  ;;  %v291_v18 = vadd.f32 %v1540_v14, %v235_v59  ;;  %v326_v19 = vsub.f32 %v261_v4, %v324_v11 }
 0x271   :  { %v1543_v20 = vrot.slane %v302_v15, 2  ;;  %v368_v21 = vadd.f32 %v346_v12, %v236_v0 }
 0x272   :  { %v285_v25 = vsub.f32 0.0, %v284_v17  ;;  %293 = vst.msk [vmem:[#allocation2] sm:$0x3] %vm292_vm5, %v291_v18  ;;  %v1546_v26 = vrot.slane %v326_v19, 4  ;;  %v350_v27 = vsub.f32 %v261_v4, %v348_v16 }
 0x273   :  { %v306_v29 = vsub.f32 %v1540_v14, %v1543_v20  ;;  %vm311_vm6 = vcmp.ge.f32.partialorder %v1540_v14, %v1543_v20  ;;  %v387_v31 = vadd.f32 %v385_v22, %v368_v21  ;;  %v1561_v38 = vsub.f32 %v262_v28, %v368_v21 }
 0x274   :  { %v286_v34 = vmul.f32 1.442695, %v285_v25  ;;  %v1557_v35 = vsel %vm311_vm6, %v1540_v14, %v1543_v20  ;;  %v1559_v37 = vrot.slane %v350_v27, 6 }
 0x275   :  { %v307_v40 = vand.u32 2147483647, %v306_v29  ;;  %v317_v41 = vadd.f32 %v1557_v35, %v298_v2  ;;  %v330_v42 = vsub.f32 %v1557_v35, %v1546_v26  ;;  %vm335_vm7 = vcmp.ge.f32.partialorder %v1557_v35, %v1546_v26 }
 0x276   :  { %1323 = vpow2.f32 %v286_v34  ;;  %v1573_v43 = vsel %vm335_vm7, %v1557_v35, %v1546_v26  ;;  %v389_v44 = vrot.slane %v387_v31, 6  ;;  %v411_v45 = vadd.f32 %v409_v23, %v387_v31 }
 0x277   :  { %v308_v46 = vsub.f32 0.0, %v307_v40  ;;  %318 = vst.msk [vmem:[#allocation2 + $0x2] sm:$0x3] %vm292_vm5, %v317_v41  ;;  %v331_v47 = vand.u32 2147483647, %v330_v42  ;;  %v341_v48 = vadd.f32 %v1573_v43, %v322_v7  ;;  %v354_v49 = vsub.f32 %v1573_v43, %v1559_v37 }
 0x278   :  { %vm359_vm8 = vcmp.ge.f32.partialorder %v1573_v43, %v1559_v37  ;;  %v413_v50 = vrot.slane %v411_v45, 4  ;;  %v435_v51 = vadd.f32 %v433_v33, %v411_v45  ;;  %v391_v52 = vsub.f32 %v262_v28, %v389_v44 }
 0x279   :  { %v309_v53 = vmul.f32 1.442695, %v308_v46  ;;  %v332_v54 = vsub.f32 0.0, %v331_v47  ;;  %342 = vst.msk [vmem:[#allocation2 + $0x4] sm:$0x3] %vm292_vm5, %v341_v48  ;;  %v1587_v56 = vsel %vm359_vm8, %v1573_v43, %v1559_v37 }
 0x27a   :  { %v355_v55 = vand.u32 2147483647, %v354_v49  ;;  %v365_v57 = vadd.f32 %v1587_v56, %v346_v12  ;;  %v437_v58 = vrot.slane %v435_v51, 2  ;;  %v370_v59 = vsub.f32 %v1587_v56, %v1561_v38 }
 0x27b   :  { %vm375_vm9 = vcmp.ge.f32.partialorder %v1587_v56, %v1561_v38  ;;  %1325 = vpow2.f32 %v309_v53  ;;  %v333_v61 = vmul.f32 1.442695, %v332_v54  ;;  %v1603_v63 = vrot.slane %v391_v52, 2 }
 0x27c   :  { %v1599_v60 = vsel %vm375_vm9, %v1587_v56, %v1561_v38  ;;  %366 = vst.msk [vmem:[#allocation2 + $0x6] sm:$0x3] %vm292_vm5, %v365_v57  ;;  %v415_v0 = vsub.f32 %v262_v28, %v413_v50  ;;  %v356_v1 = vsub.f32 0.0, %v355_v55  ;;  %v439_v2 = vsub.f32 %v262_v28, %v437_v58 }
 0x27d   :  { %v381_v62 = vadd.f32 %v1599_v60, %v368_v21  ;;  %v371_v3 = vand.u32 2147483647, %v370_v59  ;;  %vm400_vm10 = vcmp.ge.f32.partialorder %v1599_v60, %v1603_v63  ;;  %v395_v5 = vsub.f32 %v1599_v60, %v1603_v63 }
 0x27e   :  { %v1608_v4 = vrot.slane %v415_v0, 4  ;;  %v1617_v6 = vsel %vm400_vm10, %v1599_v60, %v1603_v63  ;;  %v1619_v7 = vrot.slane %v439_v2, 6  ;;  %1327 = vpow2.f32 %v333_v61 }
 0x27f   :  { %382 = vst.msk [vmem:[#allocation2 + $0x8] sm:$0x3] %vm292_vm5, %v381_v62  ;;  %v406_v9 = vadd.f32 %v1617_v6, %v387_v31  ;;  %v357_v11 = vmul.f32 1.442695, %v356_v1  ;;  %v372_v12 = vsub.f32 0.0, %v371_v3 }
 0x280   :  { %v1324_v8 = vpop.eup %1323  ;;  %vm424_vm11 = vcmp.ge.f32.partialorder %v1617_v6, %v1608_v4  ;;  %v396_v15 = vand.u32 2147483647, %v395_v5  ;;  %v419_v17 = vsub.f32 %v1617_v6, %v1608_v4 }
 0x281   :  { %v290_v10 = vadd.f32 1.0, %v1324_v8  ;;  %407 = vst.msk [vmem:[#allocation2 + $0xa] sm:$0x3] %vm292_vm5, %v406_v9  ;;  %v1630_v13 = vsel %vm424_vm11, %v1617_v6, %v1608_v4  ;;  %1329 = vpow2.f32 %v357_v11  ;;  %v373_v23 = vmul.f32 1.442695, %v372_v12 }
 0x282   :  { %v430_v16 = vadd.f32 %v1630_v13, %v411_v45  ;;  %vm448_vm12 = vcmp.ge.f32.partialorder %v1630_v13, %v1619_v7  ;;  %v397_v24 = vsub.f32 0.0, %v396_v15  ;;  %v420_v28 = vand.u32 2147483647, %v419_v17  ;;  %v1016_v6 = vld [vmem:[#allocation7 + $0x162] ss:$0 sm:$0xff] }
 0x283   :  { %294 = vst.msk [vmem:[#allocation3] sm:$0x3] %vm292_vm5, %v290_v10  ;;  %v449_v18 = vsel %vm448_vm12, %v1630_v13, %v1619_v7  ;;  %v443_v29 = vsub.f32 %v1630_v13, %v1619_v7  ;;  %1331 = vpow2.f32 %v373_v23  ;;  %v461_v41 = vld [vmem:[#allocation2] sm:$0xff] }
 0x284   :  { %431 = vst.msk [vmem:[#allocation2 + $0xc] sm:$0x3] %vm292_vm5, %v430_v16  ;;  %v454_v21 = vadd.f32 %v449_v18, %v435_v51  ;;  %v398_v40 = vmul.f32 1.442695, %v397_v24  ;;  %v421_v42 = vsub.f32 0.0, %v420_v28 }
 0x285   :  { %v1326_v19 = vpop.eup %1325  ;;  %v444_v46 = vand.u32 2147483647, %v443_v29  ;;  %v463_v47 = vmul.f32 1.442695, %v461_v41 }
 0x286   :  { %v314_v22 = vmul.f32 %v1326_v19, %v290_v10  ;;  %455 = vst.msk [vmem:[#allocation2 + $0xe] sm:$0x3] %vm292_vm5, %v454_v21  ;;  %v313_v25 = vadd.f32 %v1326_v19, %v290_v10  ;;  %1333 = vpow2.f32 %v398_v40  ;;  %v422_v20 = vmul.f32 1.442695, %v421_v42  ;;  %v659_v40 = vld [vmem:[#allocation7 + $0x48] sm:$0xff]  ;;  %v661_v42 = vld [vmem:[#allocation7 + $0x58] sm:$0xff] }
 0x287   :  { %v445_v50 = vsub.f32 0.0, %v444_v46  ;;  %1335 = vpow2.f32 %v463_v47  ;;  %v457_v62 = vmul.f32 1.442695, %v454_v21  ;;  %v663_v46 = vld [vmem:[#allocation7 + $0x68] sm:$0xff] }
 0x288   :  { %v315_v27 = vadd.f32 1.0, %v314_v22  ;;  %v1328_v31 = vpop.eup %1327  ;;  %1337 = vpow2.f32 %v422_v20  ;;  %v666_v20 = vld [vmem:[#allocation7 + $0x80] sm:$0xff] }
 0x289   :  { %v446_v26 = vmul.f32 1.442695, %v445_v50  ;;  %v667_v50 = vld [vmem:[#allocation7 + $0x88] sm:$0xff] }
 0x28a   :  { %v316_v33 = vsel %vm311_vm6, %v313_v25, %v315_v27 }
 0x28b   :  { %319 = vst.msk [vmem:[#allocation3 + $0x2] sm:$0x3] %vm292_vm5, %v316_v33  ;;  %v338_v34 = vmul.f32 %v1328_v31, %v316_v33  ;;  %v337_v44 = vadd.f32 %v1328_v31, %v316_v33  ;;  %v1330_v48 = vpop.eup %1329  ;;  %1339 = vpow2.f32 %v446_v26 }
 0x28c   :  { %1341 = vpow2.f32 %v457_v62 }
 0x28d   :  { %v339_v45 = vadd.f32 1.0, %v338_v34  ;;  %v1332_v53 = vpop.eup %1331  ;;  %v462_v56 = vld [vmem:[#allocation2 + $0x8] sm:$0xff] }
 0x28e   :  { %v465_v10 = vmul.f32 1.442695, %v462_v56  ;;  %v669_v56 = vld [vmem:[#allocation7 + $0x98] sm:$0xff] }
 0x28f   :  { %v340_v49 = vsel %vm335_vm7, %v337_v44, %v339_v45  ;;  %v662_v45 = vld [vmem:[#allocation7 + $0x60] sm:$0xff] }
 0x290   :  { %343 = vst.msk [vmem:[#allocation3 + $0x4] sm:$0x3] %vm292_vm5, %v340_v49  ;;  %v362_v14 = vmul.f32 %v1330_v48, %v340_v49  ;;  %v361_v51 = vadd.f32 %v1330_v48, %v340_v49  ;;  %v1334_v58 = vpop.eup %1333  ;;  %1343 = vpow2.f32 %v465_v10  ;;  %v1205_v47 = vpack.c.bf16 %v663_v46, %v662_v45  ;;  %v664_v48 = vld [vmem:[#allocation7 + $0x70] sm:$0xff]  ;;  %v665_v49 = vld [vmem:[#allocation7 + $0x78] sm:$0xff] }
 0x291   :  { %v1336_v0 = vpop.eup %1335 }
 0x292   :  { %v363_v52 = vadd.f32 1.0, %v362_v14  ;;  %v1338_v3 = vpop.eup %1337  ;;  %v1209_v14 = vpack.c.bf16 %v665_v49, %v664_v48 }
 0x294   :  { %v364_v54 = vsel %vm359_vm8, %v361_v51, %v363_v52  ;;  %v1213_v51 = vpack.c.bf16 %v667_v50, %v666_v20 }
 0x295   :  { %367 = vst.msk [vmem:[#allocation3 + $0x6] sm:$0x3] %vm292_vm5, %v364_v54  ;;  %v378_v55 = vmul.f32 %v1332_v53, %v364_v54  ;;  %v377_v35 = vadd.f32 %v1332_v53, %v364_v54  ;;  %v1340_v11 = vpop.eup %1339 }
 0x296   :  { %v1342_v16 = vpop.eup %1341 }
 0x297   :  { %v379_v57 = vadd.f32 1.0, %v378_v55 }
 0x299   :  { %v380_v59 = vsel %vm375_vm9, %v377_v35, %v379_v57 }
 0x29a   :  { %383 = vst.msk [vmem:[#allocation3 + $0x8] sm:$0x3] %vm292_vm5, %v380_v59  ;;  %v403_v61 = vmul.f32 %v1334_v58, %v380_v59  ;;  %v402_v37 = vadd.f32 %v1334_v58, %v380_v59  ;;  %v1344_v19 = vpop.eup %1343 }
 0x29c   :  { %v404_v43 = vadd.f32 1.0, %v403_v61  ;;  %v467_v1 = vld [vmem:[#allocation3] sm:$0xff] }
 0x29d   :  { %v469_v2 = vmul.f32 %v1336_v0, %v467_v1  ;;  %v596_v1 = vlaneseq }
 0x29e   :  { %v405_v5 = vsel %vm400_vm10, %v402_v37, %v404_v43 }
 0x29f   :  { %408 = vst.msk [vmem:[#allocation3 + $0xa] sm:$0x3] %vm292_vm5, %v405_v5  ;;  %v427_v38 = vmul.f32 %v1338_v3, %v405_v5  ;;  %1097 = vmatprep.mubr.msk.f32.mxu1 %vm55_vm0, %v469_v2  ;;  %v426_v8 = vadd.f32 %v1338_v3, %v405_v5 }
 0x2a1   :  { %v428_v9 = vadd.f32 1.0, %v427_v38  ;;  %v668_v38 = vld [vmem:[#allocation7 + $0x90] sm:$0xff] }
 0x2a3   :  { %v429_v12 = vsel %vm424_vm11, %v426_v8, %v428_v9  ;;  %v597_v8 = vshrl.u32 %v596_v1, 7  ;;  %v1217_v9 = vpack.c.bf16 %v669_v56, %v668_v38 }
 0x2a4   :  { %432 = vst.msk [vmem:[#allocation3 + $0xc] sm:$0x3] %vm292_vm5, %v429_v12  ;;  %v451_v15 = vmul.f32 %v1340_v11, %v429_v12  ;;  %v450_v60 = vadd.f32 %v1340_v11, %v429_v12 }
 0x2a5   :  { %vm612_vm14 = vcmp.lt.s32.totalorder %v597_v8, 6  ;;  %vm621_vm15 = vcmp.lt.s32.totalorder %v597_v8, 4  ;;  %vm603_vm2 = vcmp.lt.s32.totalorder %v597_v8, 2  ;;  %vm599_vm3 = vcmp.ge.s32.totalorder %v597_v8, 2 }
 0x2a6   :  { %v452_v63 = vadd.f32 1.0, %v451_v15  ;;  %v670_v15 = vld [vmem:[#allocation7 + $0xa0] sm:$0xff] }
 0x2a8   :  { %v453_v17 = vsel %vm448_vm12, %v450_v60, %v452_v63  ;;  %v671_v60 = vld [vmem:[#allocation7 + $0xa8] sm:$0xff] }
 0x2a9   :  { %456 = vst.msk [vmem:[#allocation3 + $0xe] sm:$0x3] %vm292_vm5, %v453_v17  ;;  %v459_v18 = vmul.f32 %v1342_v16, %v453_v17  ;;  %v1221_v16 = vpack.c.bf16 %v671_v60, %v670_v15  ;;  %v880_v60 = vld [vmem:[#allocation7 + $0xc0] sm:$0xff] }
 0x2ab   :  { %460 = vst.msk [vmem:[#allocation10] sm:$0x3] %vm292_vm5, %v459_v18  ;;  %v598_v18 = vadd.s32 8, %v597_v8  ;;  %vm655_vm5 = vcmask 785408   ;;  %v789_v8 = vld [vmem:[#allocation7 + $0x140] sm:$0xff] }
 0x2ad   :  { %vm609_vm13 = vcmp.lt.s32.totalorder %v598_v18, 14  ;;  %vm618_vm1 = vcmp.lt.s32.totalorder %v598_v18, 12 }
 0x2b0   :  { %v468_v21 = vld [vmem:[#allocation3 + $0x8] sm:$0xff] }
 0x2b1   :  { %v470_v4 = vmul.f32 %v1344_v19, %v468_v21  ;;  %v672_v21 = vld [vmem:[#allocation7 + $0xb0] sm:$0xff] }
 0x2b3   :  { %1098 = vmatmul.mubr.msk.f32.vlgmr.msra.gmra.mrb[0].mxu1 %vm55_vm0, %v470_v4  ;;  %v673_v4 = vld [vmem:[#allocation7 + $0xb8] sm:$0xff] }
 0x386   :  { %v1099_v22 = vpop.f32.mrb[0].mxu1 }
 0x387   :  { %v557_v23 = vadd.f32 %v1099_v22, %v1016_v6  ;;  %v551_v24 = vpop.f32.mrb[1].mxu1  ;;  %v1225_v22 = vpack.c.bf16 %v673_v4, %v672_v21 }
 0x388   :  { %v552_v25 = vadd.f32 %v1016_v6, %v551_v24 }
 0x389   :  { %v1679_v27 = vadd.f32 %v557_v23, %v1529_v39  ;;  %v658_v39 = vld [vmem:[#allocation7 + $0x40] sm:$0xff] }
 0x38a   :  { %v560_v7 = vadd.f32 %v552_v25, %v1523_v36  ;;  %v660_v36 = vld [vmem:[#allocation7 + $0x50] sm:$0xff]  ;;  %v1197_v41 = vpack.c.bf16 %v659_v40, %v658_v39 }
 0x38b   :  { %v565_v13 = vsel %vm55_vm0, %v1679_v27, 0.0  ;;  %v569_v33 = vmul.f32 %v1679_v27, %v1679_v27  ;;  %v1201_v44 = vpack.c.bf16 %v661_v42, %v660_v36 }
 0x38c   :  { %566 = vadd.xlane.f32.xlu1 %v565_v13  ;;  %v562_v28 = vsel %vm55_vm0, %v560_v7, 0.0  ;;  %v568_v29 = vmul.f32 %v560_v7, %v560_v7  ;;  %1198 = vmatprep.subr.bf16.mxu0 %v1197_v41 }
 0x38d   :  { %563 = vadd.xlane.f32.xlu0 %v562_v28  ;;  %v573_v34 = vsel %vm55_vm0, %v569_v33, 0.0  ;;  %1200 = vmatpush3.bf16.msra.mxu0 %v1197_v41 }
 0x38e   :  { %v570_v31 = vsel %vm55_vm0, %v568_v29, 0.0  ;;  %1202 = vmatprep.subr.bf16.mxu0 %v1201_v44 }
 0x391   :  { %571 = vadd.xlane.f32.xlu0 %v570_v31  ;;  %1204 = vmatpush3.bf16.msra.mxu0 %v1201_v44 }
 0x392   :  { %1206 = vmatprep.subr.bf16.mxu0 %v1205_v47 }
 0x395   :  { %574 = vadd.xlane.f32.xlu0 %v573_v34  ;;  %1208 = vmatpush3.bf16.msra.mxu0 %v1205_v47 }
 0x396   :  { %1210 = vmatprep.subr.bf16.mxu0 %v1209_v14 }
 0x399   :  { %1212 = vmatpush3.bf16.msra.mxu0 %v1209_v14 }
 0x39a   :  { %1214 = vmatprep.subr.bf16.mxu0 %v1213_v51 }
 0x39d   :  { %1216 = vmatpush3.bf16.msra.mxu0 %v1213_v51 }
 0x39e   :  { %1218 = vmatprep.subr.bf16.mxu0 %v1217_v9 }
 0x3a1   :  { %1220 = vmatpush3.bf16.msra.mxu0 %v1217_v9  ;;  %v790_v9 = vld [vmem:[#allocation7 + $0x148] sm:$0xff] }
 0x3a2   :  { %1222 = vmatprep.subr.bf16.mxu0 %v1221_v16 }
 0x3a5   :  { %1224 = vmatpush3.bf16.msra.mxu0 %v1221_v16 }
 0x3a6   :  { %1226 = vmatprep.subr.bf16.mxu0 %v1225_v22 }
 0x3a9   :  { %1228 = vmatpush3.bf16.msra.mxu0 %v1225_v22 }
 0x419   :  { %v567_v54 = vpop.xlane.xlu1 %566 }
 0x41a   :  { %v564_v52 = vpop.xlane.xlu0 %563  ;;  %v577_v26 = vmul.f32 0.03125, %v567_v54 }
 0x41b   :  { %v576_v53 = vmul.f32 0.03125, %v564_v52 }
 0x41c   :  { %v581_v61 = vmul.f32 %v577_v26, %v577_v26  ;;  %v585_v10 = vsub.f32 %v1679_v27, %v577_v26 }
 0x41d   :  { %v580_v35 = vmul.f32 %v576_v53, %v576_v53  ;;  %v584_v2 = vsub.f32 %v560_v7, %v576_v53 }
 0x41e   :  { %v572_v55 = vpop.xlane.xlu0 %571 }
 0x41f   :  { %v578_v57 = vmul.f32 0.03125, %v572_v55 }
 0x421   :  { %v582_v58 = vsub.f32 %v578_v57, %v580_v35 }
 0x422   :  { %v575_v59 = vpop.xlane.xlu0 %574 }
 0x423   :  { %v586_v62 = vadd.f32 1e-05, %v582_v58  ;;  %v579_v0 = vmul.f32 0.03125, %v575_v59  ;;  %v1019_v58 = vld [vmem:[#allocation7 + $0x163] ss:$0 sm:$0xff] }
 0x425   :  { %1345 = vrsqrt.f32 %v586_v62  ;;  %v583_v37 = vsub.f32 %v579_v0, %v581_v61 }
 0x427   :  { %v587_v43 = vadd.f32 1e-05, %v583_v37 }
 0x429   :  { %1347 = vrsqrt.f32 %v587_v43 }
 0x42f   :  { %v1346_v3 = vpop.eup %1345 }
 0x430   :  { %v590_v5 = vmul.f32 %v1346_v3, %v584_v2 }
 0x432   :  { %v592_v11 = vmul.f32 %v1517_v30, %v590_v5 }
 0x433   :  { %v1348_v12 = vpop.eup %1347 }
 0x434   :  { %v591_v63 = vmul.f32 %v1348_v12, %v585_v10  ;;  %v1692_v17 = vadd.f32 %v1519_v32, %v592_v11  ;;  %v1229_v10 = vpack.c.bf16 %v790_v9, %v789_v8  ;;  %v791_v11 = vld [vmem:[#allocation7 + $0x150] sm:$0xff]  ;;  %v792_v12 = vld [vmem:[#allocation7 + $0x158] sm:$0xff] }
 0x435   :  { %v1233_v15 = vpack.c.bf16 %v792_v12, %v791_v11 }
 0x436   :  { %v593_v19 = vmul.f32 %v1517_v30, %v591_v63  ;;  %v610_v23 = vrot.slane %v1692_v17, 2  ;;  %v619_v27 = vrot.slane %v1692_v17, 4  ;;  %v601_v42 = vrot.slane %v1692_v17, 6  ;;  %1230 = vmatprep.subr.bf16.mxu1 %v1229_v10  ;;  %v881_v63 = vld [vmem:[#allocation7 + $0xc8] sm:$0xff] }
 0x437   :  { %1232 = vmatpush3.bf16.msra.mxu1 %v1229_v10  ;;  %v1237_v16 = vpack.c.bf16 %v881_v63, %v880_v60 }
 0x438   :  { %v595_v6 = vadd.f32 %v1519_v32, %v593_v19  ;;  %1234 = vmatprep.subr.bf16.mxu1 %v1233_v15 }
 0x43a   :  { %v1278_v24 = vpack.i.bf16 %v595_v6, %v1692_v17  ;;  %v611_v25 = vrot.slane %v595_v6, 2  ;;  %v620_v7 = vrot.slane %v595_v6, 4  ;;  %v602_v36 = vrot.slane %v595_v6, 6 }
 0x43b   :  { %1236 = vmatpush3.bf16.msra.mxu1 %v1233_v15 }
 0x43c   :  { %1279 = vrot.lane.b32.xlu0 %v1278_v24, %s1455_s1  ;;  %v613_v13 = vsel %vm612_vm14, %v610_v23, %v611_v25  ;;  %v614_v28 = vsel %vm612_vm14, %v611_v25, %v610_v23  ;;  %v623_v29 = vsel %vm621_vm15, %v620_v7, %v619_v27  ;;  %v622_v34 = vsel %vm621_vm15, %v619_v27, %v620_v7 }
 0x43d   :  { %v616_v31 = vsel %vm609_vm13, %v614_v28, 0.0  ;;  %v625_v39 = vsel %vm618_vm1, %v623_v29, 0.0  ;;  %v605_v47 = vsel %vm603_vm2, %v602_v36, %v601_v42  ;;  %v604_v14 = vsel %vm603_vm2, %v601_v42, %v602_v36  ;;  %1238 = vmatprep.subr.bf16.mxu1 %v1237_v16  ;;  %v882_v42 = vld [vmem:[#allocation7 + $0xd0] sm:$0xff] }
 0x43e   :  { %v1283_v33 = vpack.i.bf16 %v616_v31, %v613_v13  ;;  %v1288_v40 = vpack.i.bf16 %v625_v39, %v622_v34  ;;  %v606_v50 = vsel %vm599_vm3, %v605_v47, 0.0 }
 0x440   :  { %1284 = vrot.lane.b32.xlu1 %v1283_v33, %s1454_s14 }
 0x444   :  { %1289 = vrot.lane.b32.xlu1 %v1288_v40, %s1453_s2 }
 0x4ae   :  { %v1280_v41 = vpop.permute.xlu0 %1279 }
 0x4af   :  { %v1282_v45 = vunpack.i.h.bf16 %v1280_v41  ;;  %v1281_v46 = vunpack.i.l.bf16 %v1280_v41 }
 0x4b1   :  { %v651_v51 = vsel %vm55_vm0, %v604_v14, %v1282_v45  ;;  %v650_v54 = vsel %vm55_vm0, %v606_v50, %v1281_v46  ;;  %v887_v50 = vld [vmem:[#allocation7 + $0xf8] sm:$0xff] }
 0x4b2   :  { %v1285_v44 = vpop.permute.xlu1 %1284 }
 0x4b3   :  { %v1287_v48 = vunpack.i.h.bf16 %v1285_v44  ;;  %v1286_v49 = vunpack.i.l.bf16 %v1285_v44  ;;  %v883_v44 = vld [vmem:[#allocation7 + $0xd8] sm:$0xff] }
 0x4b4   :  { %v1241_v47 = vpack.c.bf16 %v883_v44, %v882_v42 }
 0x4b5   :  { %v653_v55 = vsel %vm652_vm4, %v650_v54, %v1286_v49  ;;  %v654_v26 = vsel %vm652_vm4, %v651_v51, %v1287_v48  ;;  %v884_v48 = vld [vmem:[#allocation7 + $0xe0] sm:$0xff]  ;;  %v885_v49 = vld [vmem:[#allocation7 + $0xe8] sm:$0xff]  ;;  %v891_v54 = vld [vmem:[#allocation7 + $0x118] sm:$0xff] }
 0x4b6   :  { %v1290_v20 = vpop.permute.xlu1 %1289  ;;  %v1245_v14 = vpack.c.bf16 %v885_v49, %v884_v48 }
 0x4b7   :  { %v1292_v52 = vunpack.i.h.bf16 %v1290_v20  ;;  %v1291_v53 = vunpack.i.l.bf16 %v1290_v20  ;;  %v886_v20 = vld [vmem:[#allocation7 + $0xf0] sm:$0xff] }
 0x4b8   :  { %v1249_v51 = vpack.c.bf16 %v887_v50, %v886_v20 }
 0x4b9   :  { %v656_v35 = vsel %vm655_vm5, %v653_v55, %v1291_v53  ;;  %v657_v57 = vsel %vm655_vm5, %v654_v26, %v1292_v52  ;;  %v888_v52 = vld [vmem:[#allocation7 + $0x100] sm:$0xff]  ;;  %v889_v53 = vld [vmem:[#allocation7 + $0x108] sm:$0xff] }
 0x4ba   :  { %1132 = vmatprep.mubr.f32.mxu0 %v656_v35  ;;  %v892_v26 = vld [vmem:[#allocation7 + $0x120] sm:$0xff]  ;;  %v893_v35 = vld [vmem:[#allocation7 + $0x128] sm:$0xff] }
 0x4bb   :  { %1133 = vmatmul.mubr.f32.vlgmr.msra.gmra.mrb[2].mxu0 %v657_v57  ;;  %v1261_v57 = vpack.c.bf16 %v893_v35, %v892_v26 }
 0x58e   :  { %v1134_v59 = vpop.f32.mrb[2].mxu0 }
 0x58f   :  { %v750_v61 = vadd.f32 %v1134_v59, %v1019_v58  ;;  %v744_v62 = vpop.f32.mrb[3].mxu0  ;;  %v895_v59 = vld [vmem:[#allocation7 + $0x138] sm:$0xff] }
 0x590   :  { %v745_v0 = vadd.f32 %v1019_v58, %v744_v62  ;;  %v894_v58 = vld [vmem:[#allocation7 + $0x130] sm:$0xff]  ;;  %v1020_v62 = vld [vmem:[#allocation7 + $0x166] ss:$0 sm:$0xff] }
 0x591   :  { %v754_v37 = vadd.f32 %v750_v61, %v595_v6  ;;  %v1265_v61 = vpack.c.bf16 %v895_v59, %v894_v58 }
 0x592   :  { %v753_v43 = vadd.f32 %v745_v0, %v1692_v17 }
 0x593   :  { %v758_v1 = vsel %vm55_vm0, %v754_v37, 0.0  ;;  %v762_v38 = vmul.f32 %v754_v37, %v754_v37 }
 0x594   :  { %759 = vadd.xlane.f32.xlu0 %v758_v1  ;;  %v755_v2 = vsel %vm55_vm0, %v753_v43, 0.0  ;;  %v761_v3 = vmul.f32 %v753_v43, %v753_v43 }
 0x595   :  { %756 = vadd.xlane.f32.xlu1 %v755_v2  ;;  %v766_v56 = vsel %vm55_vm0, %v762_v38, 0.0 }
 0x596   :  { %v763_v5 = vsel %vm55_vm0, %v761_v3, 0.0 }
 0x598   :  { %764 = vadd.xlane.f32.xlu0 %v763_v5 }
 0x59c   :  { %767 = vadd.xlane.f32.xlu0 %v766_v56 }
 0x621   :  { %v760_v17 = vpop.xlane.xlu0 %759 }
 0x622   :  { %v757_v18 = vpop.xlane.xlu1 %756  ;;  %v770_v6 = vmul.f32 0.03125, %v760_v17 }
 0x623   :  { %v769_v19 = vmul.f32 0.03125, %v757_v18 }
 0x624   :  { %v774_v25 = vmul.f32 %v770_v6, %v770_v6  ;;  %v778_v34 = vsub.f32 %v754_v37, %v770_v6 }
 0x625   :  { %v773_v21 = vmul.f32 %v769_v19, %v769_v19  ;;  %v765_v4 = vpop.xlane.xlu0 %764  ;;  %v777_v29 = vsub.f32 %v753_v43, %v769_v19 }
 0x626   :  { %v771_v22 = vmul.f32 0.03125, %v765_v4 }
 0x628   :  { %v775_v23 = vsub.f32 %v771_v22, %v773_v21 }
 0x629   :  { %v768_v24 = vpop.xlane.xlu0 %767 }
 0x62a   :  { %v779_v27 = vadd.f32 1e-05, %v775_v23  ;;  %v772_v7 = vmul.f32 0.03125, %v768_v24 }
 0x62c   :  { %1349 = vrsqrt.f32 %v779_v27  ;;  %v776_v13 = vsub.f32 %v772_v7, %v774_v25 }
 0x62e   :  { %v780_v28 = vadd.f32 1e-05, %v776_v13 }
 0x630   :  { %1351 = vrsqrt.f32 %v780_v28 }
 0x636   :  { %v1350_v31 = vpop.eup %1349 }
 0x637   :  { %v783_v33 = vmul.f32 %v1350_v31, %v777_v29 }
 0x639   :  { %v785_v39 = vmul.f32 %v1517_v30, %v783_v33 }
 0x63a   :  { %v1352_v40 = vpop.eup %1351 }
 0x63b   :  { %v784_v36 = vmul.f32 %v1352_v40, %v778_v34  ;;  %v1711_v41 = vadd.f32 %v1519_v32, %v785_v39 }
 0x63d   :  { %1143 = vmatprep.mubr.msk.f32.mxu1 %vm55_vm0, %v1711_v41  ;;  %v786_v45 = vmul.f32 %v1517_v30, %v784_v36  ;;  %v1253_v30 = vpack.c.bf16 %v889_v53, %v888_v52 }
 0x63f   :  { %v1717_v46 = vadd.f32 %v1519_v32, %v786_v45  ;;  %v890_v32 = vld [vmem:[#allocation7 + $0x110] sm:$0xff] }
 0x640   :  { %v1257_v55 = vpack.c.bf16 %v891_v54, %v890_v32 }
 0x641   :  { %1144 = vmatmul.mubr.msk.f32.vlgmr.msra.gmra.mrb[2].mxu1 %vm55_vm0, %v1717_v46 }
 0x642   :  { %1240 = vmatpush3.bf16.msra.mxu1 %v1237_v16 }
 0x643   :  { %1242 = vmatprep.subr.bf16.mxu1 %v1241_v47 }
 0x646   :  { %1244 = vmatpush3.bf16.msra.mxu1 %v1241_v47 }
 0x647   :  { %1246 = vmatprep.subr.bf16.mxu1 %v1245_v14 }
 0x64a   :  { %1248 = vmatpush3.bf16.msra.mxu1 %v1245_v14 }
 0x64b   :  { %1250 = vmatprep.subr.bf16.mxu1 %v1249_v51 }
 0x64e   :  { %1252 = vmatpush3.bf16.msra.mxu1 %v1249_v51 }
 0x64f   :  { %1254 = vmatprep.subr.bf16.mxu1 %v1253_v30 }
 0x652   :  { %1256 = vmatpush3.bf16.msra.mxu1 %v1253_v30 }
 0x653   :  { %1258 = vmatprep.subr.bf16.mxu1 %v1257_v55 }
 0x656   :  { %1260 = vmatpush3.bf16.msra.mxu1 %v1257_v55 }
 0x657   :  { %1262 = vmatprep.subr.bf16.mxu1 %v1261_v57 }
 0x65a   :  { %1264 = vmatpush3.bf16.msra.mxu1 %v1261_v57 }
 0x65b   :  { %1266 = vmatprep.subr.bf16.mxu1 %v1265_v61 }
 0x65e   :  { %1268 = vmatpush3.bf16.msra.mxu1 %v1265_v61 }
 0x714   :  { %v1145_v0 = vpop.f32.mrb[2].mxu1 }
 0x715   :  { %v875_v37 = vadd.f32 %v1145_v0, %v1020_v62  ;;  %v869_v43 = vpop.f32.mrb[3].mxu1 }
 0x716   :  { %v870_v1 = vadd.f32 %v1020_v62, %v869_v43 }
 0x717   :  { %v879_v3 = vmax.f32 %v875_v37, 0.0 }
 0x718   :  { %v878_v2 = vmax.f32 %v870_v1, 0.0 }
 0x71a   :  { %1178 = vmatprep.mubr.f32.mxu1 %v878_v2 }
 0x71b   :  { %1179 = vmatmul.mubr.f32.vlgmr.msra.gmra.mrb[4].mxu1 %v879_v3 }
 0x71c   :  { %1408 = shalt.err (!%p1405_p6)
}
 0x71d   :  { %s1409_s22 = scalar_lea.hbm %s1756_s4, 32 }
 0x71e   :  { %p1410_p7 = scmp.ne.s32.totalorder %s1756_s4, %s1409_s22  ;;  %p1413_p8 = scmp.lt.u32.totalorder %s1409_s22, %s1756_s4 }
 0x720   :  { %p1415_p9 = pnand %p1413_p8, %p1410_p7 }
 0x722   :  { %1418 = shalt.err (!%p1415_p9)
}
 0x723   :  { %1000 = dma.vmem_to_hbm [thread:$0]  %s998_s18, 32, %s1756_s4, [#allocation11]   ;;  %v1023_v5 = vld [vmem:[#allocation7 + $0x165] ss:$0 sm:$0xff] }
 0x724   :  { %s1457_s5 = smov [#allocation9]  }
 0x725   :  { %s984_s6 = sshll.u32 %s1457_s5, 4  ;;  %s985_s6 = int_to_ptr.vmem [resolvable:$true] %s984_s6 }
 0x726   :  { %s1419_s7 = scalar_lea.vmem %s985_s6, 256  ;;  %p1424_p11 = scmp.lt.s32.totalorder %s985_s6, %s985_s6 }
 0x727   :  { %p1420_p10 = scmp.ne.s32.totalorder %s985_s6, %s1419_s7  ;;  %p1425_p12 = scmp.lt.s32.totalorder %s1419_s7, %s1419_s7 }
 0x729   :  { %p1426_p13 = por %p1425_p12, %p1424_p11 }
 0x72b   :  { %p1427_p0 = pnand %p1426_p13, %p1420_p10 }
 0x7ee   :  { %v1180_v38 = vpop.f32.mrb[4].mxu1 }
 0x7ef   :  { %v972_v56 = vadd.f32 %v1180_v38, %v1023_v5  ;;  %v966_v8 = vpop.f32.mrb[5].mxu1 }
 0x7f0   :  { %v967_v9 = vadd.f32 %v1023_v5, %v966_v8 }
 0x7f1   :  { %v976_v10 = vadd.f32 %v972_v56, %v1717_v46 }
 0x7f2   :  { %v975_v11 = vadd.f32 %v967_v9, %v1711_v41 }
 0x7f3   :  { %978 = vst.msk [vmem:[#allocation9 + $0x8] sm:$0xff] %vm55_vm0, %v976_v10 }
 0x7f4   :  { %977 = vst.msk [vmem:[#allocation9] sm:$0xff] %vm55_vm0, %v975_v11 }
 0x7f5   :  { %1430 = shalt.err (!%p1427_p0)
}
 0x7f6   :  { %s1431_s9 = scalar_lea.hbm %s1755_s3, 256 }
 0x7f7   :  { %p1432_p1 = scmp.ne.s32.totalorder %s1755_s3, %s1431_s9  ;;  %p1435_p2 = scmp.lt.u32.totalorder %s1431_s9, %s1755_s3 }
 0x7f9   :  { %p1437_p3 = pnand %p1435_p2, %p1432_p1 }
 0x7fb   :  { %1440 = shalt.err (!%p1437_p3)
}
 0x7fc   :  { %990 = dma.vmem_to_hbm [thread:$0]  %s985_s6, 256, %s1755_s3, [#allocation6], %s1450_s25, %s1450_s25, %s1451_s26  }
 0x7fd   :  { %1445 = dma.done.wait [#allocation6], 256  }
 0x7fe   :  { %1446 = vsyncadd [#allocation6], 4294967040 }
 0x7ff   :  { %1447 = dma.done.wait [#allocation11], 32  }
 0x800   :  { %1448 = vsyncadd [#allocation11], 4294967264 }
 0x801   :  { %1007 = vsyncpa [#allocation5], 1 }
 0x802   :  { %1008 = vsyncpa [#allocation8], 1 }
 0x803   :  { %1009 = vsyncpa [#allocation6], 1 }
 0x804   :  { %1010 = vsyncpa [#allocation11], 1 }

</bundles_post_ra>
